<compile_context>
chip_gen: v6e
topology: v6e:2x2x1
jax: 0.10.0
libtpu: 0.0.40
codegen_flags: <defaults>
</compile_context>

<pallas_src>
import functools

import jax
import jax.numpy as jnp
from jax.experimental import pallas as pl
from jax.experimental.pallas import tpu as pltpu


def _round_up(x: int, m: int) -> int:
    return (x + m - 1) // m * m


def _pick_row_tile(M: int, tm_max: int) -> int:
    """Row tile: multiple of 16 (bf16 sublane packing), never larger than
    needed for M, and shrunk so the row grid has >= 2 steps whenever M allows
    it so the 'parallel' row axis can shard across v7x's two TensorCores."""
    tm = min(tm_max, _round_up(M, 16))
    if M > tm_max:
        return tm_max
    if M >= 32 and pl.cdiv(M, tm) < 2:
        tm = _round_up(pl.cdiv(M, 2), 16)
    return tm


def _ffw_kernel(x_ref, w1_ref, b1_ref, w2_ref, b2_ref, o_ref):
    # x_ref: (tm, Cp) bf16    w1_ref: (Cp, Hp) bf16   b1_ref: (1, Hp) f32
    # w2_ref: (Hp, Cp) bf16   b2_ref: (1, Cp) f32     o_ref: (tm, Cp) out_dtype
    x = x_ref[...]
    # First linear: MXU matmul with f32 accumulation, bias added in f32.
    h = jnp.dot(x, w1_ref[...], preferred_element_type=jnp.float32) + b1_ref[...]
    h = jnp.maximum(h, 0.0)                                   # ReLU
    # Second linear: downcast ReLU output to bf16 for the MXU, accumulate f32.
    y = jnp.dot(h.astype(w2_ref.dtype), w2_ref[...],
                preferred_element_type=jnp.float32) + b2_ref[...]
    o_ref[...] = y.astype(o_ref.dtype)                        # Dropout(eval) == identity


@functools.partial(jax.jit, static_argnames=("tm_max", "compute_dtype"))
def feed_forward(x, w1, b1, w2, b2, *, tm_max=256, compute_dtype=jnp.bfloat16):
    """x: (B, T, C) -> (B, T, C).  w1:(C,4C) b1:(4C,) w2:(4C,C) b2:(C,).

    Output dtype follows x.dtype (pass bf16 activations for a bf16 output
    block and half the writeback traffic).  On v7x with large M, tm_max=512
    is a reasonable bump (halves grid steps; h scratch stays ~3 MiB).
    """
    B, T, C = x.shape
    H = w1.shape[1]
    M = B * T

    # Lane padding only (no-op at C=384 / H=1536).  Rows are NOT padded:
    # grid = cdiv(M, tm) and Pallas masks the ragged last row block.
    Cp = _round_up(C, 128)
    Hp = _round_up(H, 128)
    tm = _pick_row_tile(M, tm_max)
    steps = pl.cdiv(M, tm)

    x2 = x.reshape(M, C).astype(compute_dtype)
    if Cp != C:
        x2 = jnp.pad(x2, ((0, 0), (0, Cp - C)))

    w1c = w1.astype(compute_dtype)
    w2c = w2.astype(compute_dtype)
    if (Cp, Hp) != (C, H):
        w1c = jnp.pad(w1c, ((0, Cp - C), (0, Hp - H)))
        w2c = jnp.pad(w2c, ((0, Hp - H), (0, Cp - C)))

    b1_2 = jnp.pad(b1.astype(jnp.float32), (0, Hp - H)).reshape(1, Hp)
    b2_2 = jnp.pad(b2.astype(jnp.float32), (0, Cp - C)).reshape(1, Cp)

    out_dtype = x.dtype
    bpe = jnp.dtype(compute_dtype).itemsize
    out_bpe = jnp.dtype(out_dtype).itemsize

    flops = 4 * (steps * tm) * Cp * Hp                        # two matmuls
    bytes_accessed = (M * Cp * bpe                            # x in
                      + 2 * Cp * Hp * bpe                     # W1, W2
                      + (Hp + Cp) * 4                         # biases (f32)
                      + M * Cp * out_bpe)                     # out

    # VMEM budget from the real footprint (the auto-pipeliner double-buffers
    # every input, including the constant-index weights), 2x headroom, floored
    # at the 32 MiB scoped default, capped at 48 MiB (never ask for all of
    # v7x's 64 MiB physical VMEM).
    vmem_est = (2 * tm * Cp * (bpe + out_bpe)                 # x tile + out tile
                + 2 * 2 * Cp * Hp * bpe                       # W1 + W2
                + 2 * (Hp + Cp) * 4                           # biases
                + 2 * tm * Hp * 4)                            # f32 hidden + temps
    vmem_limit = int(min(48 * 2**20, max(32 * 2**20, 2 * vmem_est)))

    out = pl.pallas_call(
        _ffw_kernel,
        out_shape=jax.ShapeDtypeStruct((M, Cp), out_dtype),
        grid_spec=pltpu.PrefetchScalarGridSpec(
            num_scalar_prefetch=0,
            grid=(steps,),
            in_specs=[
                pl.BlockSpec((tm, Cp), lambda i: (i, 0)),     # x rows (pipelined)
                pl.BlockSpec((Cp, Hp), lambda i: (0, 0)),     # W1 (resident)
                pl.BlockSpec((1, Hp), lambda i: (0, 0)),      # b1 (resident, f32)
                pl.BlockSpec((Hp, Cp), lambda i: (0, 0)),     # W2 (resident)
                pl.BlockSpec((1, Cp), lambda i: (0, 0)),      # b2 (resident, f32)
            ],
            out_specs=pl.BlockSpec((tm, Cp), lambda i: (i, 0)),
        ),
        compiler_params=pltpu.CompilerParams(
            dimension_semantics=("parallel",),
            vmem_limit_bytes=vmem_limit,
        ),
        cost_estimate=pl.CostEstimate(
            flops=flops, transcendentals=0, bytes_accessed=bytes_accessed),
    )(x2, w1c, b1_2, w2c, b2_2)

    if Cp != C:
        out = out[:, :C]
    return out.reshape(B, T, C)


def _init_params(key, n_embd, dtype=jnp.float32):
    """Deterministic init mimicking PyTorch nn.Linear (U[-1/sqrt(fan_in), 1/sqrt(fan_in)])."""
    hidden = 4 * n_embd
    k1, k2, k3, k4 = jax.random.split(key, 4)
    bound1 = 1.0 / (n_embd ** 0.5)
    bound2 = 1.0 / (hidden ** 0.5)
    w1 = jax.random.uniform(k1, (n_embd, hidden), dtype, -bound1, bound1)
    b1 = jax.random.uniform(k2, (hidden,), dtype, -bound1, bound1)
    w2 = jax.random.uniform(k3, (hidden, n_embd), dtype, -bound2, bound2)
    b2 = jax.random.uniform(k4, (n_embd,), dtype, -bound2, bound2)
    return w1, b1, w2, b2


if __name__ == "__main__":
    # Small shapes consistent with the module: (batch, seq, n_embd), n_embd=384.
    B, T, C = 2, 8, 384
    key = jax.random.PRNGKey(0)
    kx, kp = jax.random.split(key)
    x = jax.random.normal(kx, (B, T, C), jnp.float32)
    w1, b1, w2, b2 = _init_params(kp, C)

    out = feed_forward(x, w1, b1, w2, b2)
    out = jax.block_until_ready(out)
    assert out.shape == (B, T, C)
    assert out.dtype == x.dtype

    # Pure-JAX reference with the same bf16-operand / f32-accumulation recipe
    # (eval-mode dropout == identity).
    bf = jnp.bfloat16
    xr = x.reshape(-1, C).astype(bf)
    h_ref = jnp.maximum(
        jnp.dot(xr, w1.astype(bf), preferred_element_type=jnp.float32) + b1, 0.0)
    ref = (jnp.dot(h_ref.astype(bf), w2.astype(bf),
                   preferred_element_type=jnp.float32) + b2).reshape(B, T, C)
    assert jnp.allclose(out, ref, atol=1e-2, rtol=1e-2), (
        float(jnp.max(jnp.abs(out - ref))))

    print("KERNEL_OK")
</pallas_src>

<mosaic_0001>
module attributes {stable_mosaic.version = 11 : i64} {
  func.func @_ffw_kernel(%arg0: i32, %arg1: memref<16x384xbf16, #tpu.memory_space<vmem>>, %arg2: memref<384x1536xbf16, #tpu.memory_space<vmem>>, %arg3: memref<1x1536xf32, #tpu.memory_space<vmem>>, %arg4: memref<1536x384xbf16, #tpu.memory_space<vmem>>, %arg5: memref<1x384xf32, #tpu.memory_space<vmem>>, %arg6: memref<16x384xf32, #tpu.memory_space<vmem>>) attributes {dimension_semantics = [#tpu.dimension_semantics<parallel>], iteration_bounds = array<i64: 1>, scalar_prefetch = 0 : i64, scratch_operands = 0 : i64, tpu.core_type = #tpu.core_type<tc>, window_params = [{transform_indices = @transform_0, window_bounds = array<i64: 16, 384>}, {pipeline_mode = #tpu.pipeline_mode<synchronous>, transform_indices = @transform_1, window_bounds = array<i64: 384, 1536>}, {pipeline_mode = #tpu.pipeline_mode<synchronous>, transform_indices = @transform_2, window_bounds = array<i64: 1, 1536>}, {pipeline_mode = #tpu.pipeline_mode<synchronous>, transform_indices = @transform_3, window_bounds = array<i64: 1536, 384>}, {pipeline_mode = #tpu.pipeline_mode<synchronous>, transform_indices = @transform_4, window_bounds = array<i64: 1, 384>}, {transform_indices = @transform_5, window_bounds = array<i64: 16, 384>}]} {
    %c0 = arith.constant 0 : index
    %c0_0 = arith.constant 0 : index
    %0 = vector.load %arg1[%c0, %c0_0] : memref<16x384xbf16, #tpu.memory_space<vmem>>, vector<16x384xbf16>
    %c0_1 = arith.constant 0 : index
    %c0_2 = arith.constant 0 : index
    %1 = vector.load %arg2[%c0_1, %c0_2] : memref<384x1536xbf16, #tpu.memory_space<vmem>>, vector<384x1536xbf16>
    %cst = arith.constant dense<0.000000e+00> : vector<16x1536xf32>
    %2 = tpu.matmul %0, %1, %cst {dimension_numbers = #tpu.dot_dimension_numbers<[1], [0], [0], [1], [0, 0, 1, 1], [], []>} : vector<16x384xbf16>, vector<384x1536xbf16>, vector<16x1536xf32> -> vector<16x1536xf32>
    %c0_3 = arith.constant 0 : index
    %c0_4 = arith.constant 0 : index
    %3 = vector.load %arg3[%c0_3, %c0_4] : memref<1x1536xf32, #tpu.memory_space<vmem>>, vector<1x1536xf32>
    %4 = vector.broadcast %3 : vector<1x1536xf32> to vector<16x1536xf32>
    %5 = arith.addf %2, %4 : vector<16x1536xf32>
    %cst_5 = arith.constant 0.000000e+00 : f32
    %6 = vector.broadcast %cst_5 : f32 to vector<16x1536xf32>
    %7 = arith.maximumf %5, %6 : vector<16x1536xf32>
    %8 = arith.truncf %7 : vector<16x1536xf32> to vector<16x1536xbf16>
    %c0_6 = arith.constant 0 : index
    %c0_7 = arith.constant 0 : index
    %9 = vector.load %arg4[%c0_6, %c0_7] : memref<1536x384xbf16, #tpu.memory_space<vmem>>, vector<1536x384xbf16>
    %cst_8 = arith.constant dense<0.000000e+00> : vector<16x384xf32>
    %10 = tpu.matmul %8, %9, %cst_8 {dimension_numbers = #tpu.dot_dimension_numbers<[1], [0], [0], [1], [0, 0, 1, 1], [], []>} : vector<16x1536xbf16>, vector<1536x384xbf16>, vector<16x384xf32> -> vector<16x384xf32>
    %c0_9 = arith.constant 0 : index
    %c0_10 = arith.constant 0 : index
    %11 = vector.load %arg5[%c0_9, %c0_10] : memref<1x384xf32, #tpu.memory_space<vmem>>, vector<1x384xf32>
    %12 = vector.broadcast %11 : vector<1x384xf32> to vector<16x384xf32>
    %13 = arith.addf %10, %12 : vector<16x384xf32>
    %c0_11 = arith.constant 0 : index
    %c0_12 = arith.constant 0 : index
    %14 = vector.load %arg6[%c0_11, %c0_12] : memref<16x384xf32, #tpu.memory_space<vmem>>, vector<16x384xf32>
    tpu.vector_store %arg6[%c0_11, %c0_12], %13 {strides = array<i32>} : memref<16x384xf32, #tpu.memory_space<vmem>>, vector<16x384xf32>,
    return
  }
  func.func @transform_0(%arg0: i32) -> (i32, i32) {
    %c0_i32 = arith.constant 0 : i32
    %c0_i32_0 = arith.constant 0 : i32
    return %arg0, %c0_i32 : i32, i32
  }
  func.func @transform_1(%arg0: i32) -> (i32, i32) {
    %c0_i32 = arith.constant 0 : i32
    %c0_i32_0 = arith.constant 0 : i32
    %c0_i32_1 = arith.constant 0 : i32
    return %c0_i32, %c0_i32_0 : i32, i32
  }
  func.func @transform_2(%arg0: i32) -> (i32, i32) {
    %c0_i32 = arith.constant 0 : i32
    %c0_i32_0 = arith.constant 0 : i32
    %c0_i32_1 = arith.constant 0 : i32
    return %c0_i32, %c0_i32_0 : i32, i32
  }
  func.func @transform_3(%arg0: i32) -> (i32, i32) {
    %c0_i32 = arith.constant 0 : i32
    %c0_i32_0 = arith.constant 0 : i32
    %c0_i32_1 = arith.constant 0 : i32
    return %c0_i32, %c0_i32_0 : i32, i32
  }
  func.func @transform_4(%arg0: i32) -> (i32, i32) {
    %c0_i32 = arith.constant 0 : i32
    %c0_i32_0 = arith.constant 0 : i32
    %c0_i32_1 = arith.constant 0 : i32
    return %c0_i32, %c0_i32_0 : i32, i32
  }
  func.func @transform_5(%arg0: i32) -> (i32, i32) {
    %c0_i32 = arith.constant 0 : i32
    %c0_i32_0 = arith.constant 0 : i32
    return %arg0, %c0_i32 : i32, i32
  }
}

</mosaic_0001>

<bundles_post_ra>
// kernel: feed_forward.1
= control target key start
LH: loop header
LB: loop body
LE: loop exit
PB: predicated region body
PF: predicated region fallthrough
CT: control target
= control target key end

     0   :  { %v6410_v2 = vmov 0   ;;  %s8372_s0 = inlined_call_operand.vmem [shape: bf16[16,384], index: 0, kind: input, shape index: {}]   ;;  %s8373_s1 = inlined_call_operand.vmem [shape: bf16[384,1536], index: 1, kind: input, shape index: {}]   ;;  %s8374_s2 = inlined_call_operand.vmem [shape: f32[1,1536], index: 2, kind: input, shape index: {}]   ;;  %s8375_s3 = inlined_call_operand.vmem [shape: bf16[1536,384], index: 3, kind: input, shape index: {}]   ;;  %s8376_s4 = inlined_call_operand.vmem [shape: f32[1,384], index: 4, kind: input, shape index: {}]   ;;  %s8377_s5 = inlined_call_operand.hbm [shape: f32[16,384], index: 5, kind: output, shape index: {}]  }
   0x1   :  { %v5564_v0 = vld [vmem:[%s8373_s1 + $0x2a4] ss:$48 sps:$4 sm:$0xff]   ;;  %1909 = vmatprep.mubr.bf16.mxu1 %v6410_v2  ;;  %v5568_v3 = vld [vmem:[%s8373_s1 + $0x2a0] ss:$48 sps:$4 sm:$0xff]   ;;  %v5617_v34 = vld [vmem:[%s8373_s1 + $0x2ac] ss:$48 sps:$4 sm:$0xff]  }
   0x2   :  { %v5566_v1 = vld [vmem:[%s8373_s1 + $0x8a4] ss:$48 sps:$4 sm:$0xff]   ;;  %1834 = vmatprep.subr.bf16.mxu0 %v5564_v0  ;;  %v5569_v4 = vld [vmem:[%s8373_s1 + $0x8a0] ss:$48 sps:$4 sm:$0xff]   ;;  %v5615_v36 = vld [vmem:[%s8373_s1 + $0x2a8] ss:$48 sps:$4 sm:$0xff]  }
   0x3   :  { %1877 = vmatprep.subr.bf16.mxu1 %v5566_v1  ;;  %v5570_v5 = vld [vmem:[%s8373_s1 + $0x244] ss:$48 sps:$4 sm:$0xff]   ;;  %1835 = vmatpush1.bf16.msra.mxu0 %v5568_v3  ;;  %v5574_v7 = vld [vmem:[%s8373_s1 + $0x240] ss:$48 sps:$4 sm:$0xff]   ;;  %v5623_v39 = vld [vmem:[%s8373_s1 + $0x24c] ss:$48 sps:$4 sm:$0xff]  }
   0x4   :  { %1878 = vmatpush1.bf16.msra.mxu1 %v5569_v4  ;;  %v5572_v6 = vld [vmem:[%s8373_s1 + $0x844] ss:$48 sps:$4 sm:$0xff]   ;;  %1836 = vmatprep.subr.bf16.mxu0 %v5570_v5  ;;  %v5575_v8 = vld [vmem:[%s8373_s1 + $0x840] ss:$48 sps:$4 sm:$0xff]   ;;  %v5621_v40 = vld [vmem:[%s8373_s1 + $0x248] ss:$48 sps:$4 sm:$0xff]  }
   0x5   :  { %1879 = vmatprep.subr.bf16.mxu1 %v5572_v6  ;;  %v5576_v9 = vld [vmem:[%s8373_s1 + $0x1e4] ss:$48 sps:$4 sm:$0xff]   ;;  %v5580_v11 = vld [vmem:[%s8373_s1 + $0x1e0] ss:$48 sps:$4 sm:$0xff]   ;;  %v5629_v43 = vld [vmem:[%s8373_s1 + $0x1ec] ss:$48 sps:$4 sm:$0xff]  }
   0x6   :  { %v5578_v10 = vld [vmem:[%s8373_s1 + $0x7e4] ss:$48 sps:$4 sm:$0xff]   ;;  %v5581_v12 = vld [vmem:[%s8373_s1 + $0x7e0] ss:$48 sps:$4 sm:$0xff]   ;;  %v5627_v44 = vld [vmem:[%s8373_s1 + $0x1e8] ss:$48 sps:$4 sm:$0xff]  }
   0x7   :  { %1837 = vmatpush1.bf16.msra.mxu0 %v5574_v7  ;;  %v5582_v13 = vld [vmem:[%s8373_s1 + $0x184] ss:$48 sps:$4 sm:$0xff]   ;;  %v5586_v15 = vld [vmem:[%s8373_s1 + $0x180] ss:$48 sps:$4 sm:$0xff]   ;;  %v5635_v47 = vld [vmem:[%s8373_s1 + $0x18c] ss:$48 sps:$4 sm:$0xff]  }
   0x8   :  { %1880 = vmatpush1.bf16.msra.mxu1 %v5575_v8  ;;  %1838 = vmatprep.subr.bf16.mxu0 %v5576_v9  ;;  %v5584_v14 = vld [vmem:[%s8373_s1 + $0x784] ss:$48 sps:$4 sm:$0xff]   ;;  %v5587_v16 = vld [vmem:[%s8373_s1 + $0x780] ss:$48 sps:$4 sm:$0xff]   ;;  %v5633_v48 = vld [vmem:[%s8373_s1 + $0x188] ss:$48 sps:$4 sm:$0xff]  }
   0x9   :  { %1881 = vmatprep.subr.bf16.mxu1 %v5578_v10  ;;  %v5588_v17 = vld [vmem:[%s8373_s1 + $0x124] ss:$48 sps:$4 sm:$0xff]   ;;  %v5592_v19 = vld [vmem:[%s8373_s1 + $0x120] ss:$48 sps:$4 sm:$0xff]   ;;  %v5641_v52 = vld [vmem:[%s8373_s1 + $0x12c] ss:$48 sps:$4 sm:$0xff]  }
   0xa   :  { %v5590_v18 = vld [vmem:[%s8373_s1 + $0x724] ss:$48 sps:$4 sm:$0xff]   ;;  %v5593_v20 = vld [vmem:[%s8373_s1 + $0x720] ss:$48 sps:$4 sm:$0xff]   ;;  %v5639_v53 = vld [vmem:[%s8373_s1 + $0x128] ss:$48 sps:$4 sm:$0xff]  }
   0xb   :  { %1839 = vmatpush1.bf16.msra.mxu0 %v5580_v11  ;;  %v5594_v21 = vld [vmem:[%s8373_s1 + $0xc4] ss:$48 sps:$4 sm:$0xff]   ;;  %v5598_v23 = vld [vmem:[%s8373_s1 + $0xc0] ss:$48 sps:$4 sm:$0xff]   ;;  %v5647_v56 = vld [vmem:[%s8373_s1 + $0xcc] ss:$48 sps:$4 sm:$0xff]  }
   0xc   :  { %1882 = vmatpush1.bf16.msra.mxu1 %v5581_v12  ;;  %1840 = vmatprep.subr.bf16.mxu0 %v5582_v13  ;;  %v5596_v22 = vld [vmem:[%s8373_s1 + $0x6c4] ss:$48 sps:$4 sm:$0xff]   ;;  %v5599_v24 = vld [vmem:[%s8373_s1 + $0x6c0] ss:$48 sps:$4 sm:$0xff]   ;;  %v5645_v57 = vld [vmem:[%s8373_s1 + $0xc8] ss:$48 sps:$4 sm:$0xff]  }
   0xd   :  { %1883 = vmatprep.subr.bf16.mxu1 %v5584_v14  ;;  %v5600_v25 = vld [vmem:[%s8373_s1 + $0x64] ss:$48 sps:$4 sm:$0xff]   ;;  %v5604_v27 = vld [vmem:[%s8373_s1 + $0x60] ss:$48 sps:$4 sm:$0xff]   ;;  %v5653_v60 = vld [vmem:[%s8373_s1 + $0x6c] ss:$48 sps:$4 sm:$0xff]  }
   0xe   :  { %v5602_v26 = vld [vmem:[%s8373_s1 + $0x664] ss:$48 sps:$4 sm:$0xff]   ;;  %v5605_v28 = vld [vmem:[%s8373_s1 + $0x660] ss:$48 sps:$4 sm:$0xff]   ;;  %v5651_v61 = vld [vmem:[%s8373_s1 + $0x68] ss:$48 sps:$4 sm:$0xff]  }
   0xf   :  { %1841 = vmatpush1.bf16.msra.mxu0 %v5586_v15  ;;  %v5606_v29 = vld [vmem:[%s8373_s1 + $0x4] ss:$48 sps:$4 sm:$0xff]   ;;  %v5610_v31 = vld [vmem:[%s8373_s1] ss:$48 sps:$4 sm:$0xff]   ;;  %v5659_v0 = vld [vmem:[%s8373_s1 + $0xc] ss:$48 sps:$4 sm:$0xff]  }
  0x10   :  { %1884 = vmatpush1.bf16.msra.mxu1 %v5587_v16  ;;  %1842 = vmatprep.subr.bf16.mxu0 %v5588_v17  ;;  %v5608_v30 = vld [vmem:[%s8373_s1 + $0x604] ss:$48 sps:$4 sm:$0xff]   ;;  %v5611_v32 = vld [vmem:[%s8373_s1 + $0x600] ss:$48 sps:$4 sm:$0xff]   ;;  %v5657_v1 = vld [vmem:[%s8373_s1 + $0x8] ss:$48 sps:$4 sm:$0xff]  }
  0x11   :  { %1885 = vmatprep.subr.bf16.mxu1 %v5590_v18  ;;  %v5612_v33 = vld [vmem:[%s8373_s1 + $0x5a4] ss:$48 sps:$4 sm:$0xff]   ;;  %v5618_v37 = vld [vmem:[%s8373_s1 + $0x5a0] ss:$48 sps:$4 sm:$0xff]   ;;  %v5666_v4 = vld [vmem:[%s8373_s1 + $0x5ac] ss:$48 sps:$4 sm:$0xff]  }
  0x12   :  { %v6550_v35 = vld [vmem:[%s8372_s0 + $0x8] ss:$12 sps:$4 sm:$0xff]   ;;  %v5624_v41 = vld [vmem:[%s8373_s1 + $0x540] ss:$48 sps:$4 sm:$0xff]   ;;  %v5669_v5 = vld [vmem:[%s8373_s1 + $0x8ac] ss:$48 sps:$4 sm:$0xff]  }
  0x13   :  { %1843 = vmatpush1.bf16.msra.mxu0 %v5592_v19  ;;  %v5619_v38 = vld [vmem:[%s8373_s1 + $0x544] ss:$48 sps:$4 sm:$0xff]   ;;  %v5630_v45 = vld [vmem:[%s8373_s1 + $0x4e0] ss:$48 sps:$4 sm:$0xff]   ;;  %v5664_v7 = vld [vmem:[%s8373_s1 + $0x5a8] ss:$48 sps:$4 sm:$0xff]  }
  0x14   :  { %1886 = vmatpush1.bf16.msra.mxu1 %v5593_v20  ;;  %1844 = vmatprep.subr.bf16.mxu0 %v5594_v21  ;;  %v5625_v42 = vld [vmem:[%s8373_s1 + $0x4e4] ss:$48 sps:$4 sm:$0xff]   ;;  %v5636_v49 = vld [vmem:[%s8373_s1 + $0x480] ss:$48 sps:$4 sm:$0xff]   ;;  %v5667_v8 = vld [vmem:[%s8373_s1 + $0x8a8] ss:$48 sps:$4 sm:$0xff]  }
  0x15   :  { %1887 = vmatprep.subr.bf16.mxu1 %v5596_v22  ;;  %v5631_v46 = vld [vmem:[%s8373_s1 + $0x484] ss:$48 sps:$4 sm:$0xff]   ;;  %v5642_v54 = vld [vmem:[%s8373_s1 + $0x420] ss:$48 sps:$4 sm:$0xff]   ;;  %v5672_v9 = vld [vmem:[%s8373_s1 + $0x54c] ss:$48 sps:$4 sm:$0xff]  }
  0x16   :  { %v5637_v50 = vld [vmem:[%s8373_s1 + $0x424] ss:$48 sps:$4 sm:$0xff]   ;;  %v5648_v58 = vld [vmem:[%s8373_s1 + $0x3c0] ss:$48 sps:$4 sm:$0xff]   ;;  %v5675_v10 = vld [vmem:[%s8373_s1 + $0x84c] ss:$48 sps:$4 sm:$0xff]  }
  0x17   :  { %1845 = vmatpush1.bf16.msra.mxu0 %v5598_v23  ;;  %v6601_v51 = vld [vmem:[%s8372_s0 + $0x4] ss:$12 sps:$4 sm:$0xff]   ;;  %v6659_v6 = vld [vmem:[%s8372_s0] ss:$12 sps:$4 sm:$0xff]   ;;  %v5670_v11 = vld [vmem:[%s8373_s1 + $0x548] ss:$48 sps:$4 sm:$0xff]  }
  0x18   :  { %1888 = vmatpush1.bf16.msra.mxu1 %v5599_v24  ;;  %1846 = vmatprep.subr.bf16.mxu0 %v5600_v25  ;;  %v5643_v55 = vld [vmem:[%s8373_s1 + $0x3c4] ss:$48 sps:$4 sm:$0xff]   ;;  %v5654_v62 = vld [vmem:[%s8373_s1 + $0x360] ss:$48 sps:$4 sm:$0xff]   ;;  %v5673_v12 = vld [vmem:[%s8373_s1 + $0x848] ss:$48 sps:$4 sm:$0xff]  }
  0x19   :  { %1889 = vmatprep.subr.bf16.mxu1 %v5602_v26  ;;  %1866 = vmatprep.mubr.bf16.mxu0 %v6601_v51  ;;  %v5649_v59 = vld [vmem:[%s8373_s1 + $0x364] ss:$48 sps:$4 sm:$0xff]   ;;  %v5660_v3 = vld [vmem:[%s8373_s1 + $0x300] ss:$48 sps:$4 sm:$0xff]   ;;  %v5678_v13 = vld [vmem:[%s8373_s1 + $0x4ec] ss:$48 sps:$4 sm:$0xff]  }
  0x1a   :  { %v5655_v63 = vld [vmem:[%s8373_s1 + $0x304] ss:$48 sps:$4 sm:$0xff]   ;;  %v5681_v14 = vld [vmem:[%s8373_s1 + $0x7ec] ss:$48 sps:$4 sm:$0xff]   ;;  %v5676_v15 = vld [vmem:[%s8373_s1 + $0x4e8] ss:$48 sps:$4 sm:$0xff]  }
  0x1b   :  { %1847 = vmatpush1.bf16.msra.mxu0 %v5604_v27  ;;  %v5679_v16 = vld [vmem:[%s8373_s1 + $0x7e8] ss:$48 sps:$4 sm:$0xff]   ;;  %v5684_v17 = vld [vmem:[%s8373_s1 + $0x48c] ss:$48 sps:$4 sm:$0xff]  }
  0x1c   :  { %1890 = vmatpush1.bf16.msra.mxu1 %v5605_v28  ;;  %1848 = vmatprep.subr.bf16.mxu0 %v5606_v29  ;;  %v5687_v18 = vld [vmem:[%s8373_s1 + $0x78c] ss:$48 sps:$4 sm:$0xff]   ;;  %v5682_v19 = vld [vmem:[%s8373_s1 + $0x488] ss:$48 sps:$4 sm:$0xff]  }
  0x1d   :  { %1891 = vmatprep.subr.bf16.mxu1 %v5608_v30  ;;  %v5685_v20 = vld [vmem:[%s8373_s1 + $0x788] ss:$48 sps:$4 sm:$0xff]   ;;  %v5690_v21 = vld [vmem:[%s8373_s1 + $0x42c] ss:$48 sps:$4 sm:$0xff]  }
  0x1e   :  { %v5693_v22 = vld [vmem:[%s8373_s1 + $0x72c] ss:$48 sps:$4 sm:$0xff]   ;;  %v5688_v23 = vld [vmem:[%s8373_s1 + $0x428] ss:$48 sps:$4 sm:$0xff]  }
  0x1f   :  { %1849 = vmatpush1.bf16.msra.mxu0 %v5610_v31  ;;  %v5691_v24 = vld [vmem:[%s8373_s1 + $0x728] ss:$48 sps:$4 sm:$0xff]   ;;  %v5696_v25 = vld [vmem:[%s8373_s1 + $0x3cc] ss:$48 sps:$4 sm:$0xff]  }
  0x20   :  { %1892 = vmatpush1.bf16.msra.mxu1 %v5611_v32  ;;  %1850 = vmatprep.subr.bf16.mxu0 %v5612_v33  ;;  %v5699_v26 = vld [vmem:[%s8373_s1 + $0x6cc] ss:$48 sps:$4 sm:$0xff]   ;;  %v5694_v27 = vld [vmem:[%s8373_s1 + $0x3c8] ss:$48 sps:$4 sm:$0xff]  }
  0x21   :  { %1920 = vmatprep.subr.bf16.mxu1 %v5617_v34  ;;  %v5697_v28 = vld [vmem:[%s8373_s1 + $0x6c8] ss:$48 sps:$4 sm:$0xff]   ;;  %v5702_v29 = vld [vmem:[%s8373_s1 + $0x36c] ss:$48 sps:$4 sm:$0xff]  }
  0x22   :  { %v5705_v30 = vld [vmem:[%s8373_s1 + $0x66c] ss:$48 sps:$4 sm:$0xff]   ;;  %v5700_v31 = vld [vmem:[%s8373_s1 + $0x368] ss:$48 sps:$4 sm:$0xff]  }
  0x23   :  { %1910 = vmatmul.mubr.bf16.vlgmr.msra.gmra.mxu1 %v6550_v35  ;;  %1851 = vmatpush2.bf16.msra.mxu0 %v5618_v37  ;;  %v5703_v32 = vld [vmem:[%s8373_s1 + $0x668] ss:$48 sps:$4 sm:$0xff]   ;;  %v5708_v33 = vld [vmem:[%s8373_s1 + $0x30c] ss:$48 sps:$4 sm:$0xff]  }
  0x24   :  { %1921 = vmatpush1.bf16.msra.mxu1 %v5615_v36  ;;  %1852 = vmatprep.subr.bf16.mxu0 %v5619_v38  ;;  %v5711_v34 = vld [vmem:[%s8373_s1 + $0x60c] ss:$48 sps:$4 sm:$0xff]   ;;  %v5706_v36 = vld [vmem:[%s8373_s1 + $0x308] ss:$48 sps:$4 sm:$0xff]   ;;  %v5714_v38 = vld [vmem:[%s8373_s1 + $0x2b4] ss:$48 sps:$4 sm:$0xff]  }
  0x25   :  { %1922 = vmatprep.subr.bf16.mxu1 %v5623_v39  ;;  %1952 = vmatprep.mubr.bf16.mxu1 %v6601_v51  ;;  %v5709_v37 = vld [vmem:[%s8373_s1 + $0x608] ss:$48 sps:$4 sm:$0xff]   ;;  %v5717_v39 = vld [vmem:[%s8373_s1 + $0x8b4] ss:$48 sps:$4 sm:$0xff]  }
  0x27   :  { %1853 = vmatpush2.bf16.msra.mxu0 %v5624_v41  ;;  %v5715_v41 = vld [vmem:[%s8373_s1 + $0x8b0] ss:$48 sps:$4 sm:$0xff]  }
  0x28   :  { %1923 = vmatpush1.bf16.msra.mxu1 %v5621_v40  ;;  %1854 = vmatprep.subr.bf16.mxu0 %v5625_v42  ;;  %v5712_v40 = vld [vmem:[%s8373_s1 + $0x2b0] ss:$48 sps:$4 sm:$0xff]   ;;  %v5720_v42 = vld [vmem:[%s8373_s1 + $0x254] ss:$48 sps:$4 sm:$0xff]  }
  0x29   :  { %1924 = vmatprep.subr.bf16.mxu1 %v5629_v43  ;;  %v5723_v43 = vld [vmem:[%s8373_s1 + $0x854] ss:$48 sps:$4 sm:$0xff]  }
  0x2b   :  { %1855 = vmatpush2.bf16.msra.mxu0 %v5630_v45  ;;  %v5721_v45 = vld [vmem:[%s8373_s1 + $0x850] ss:$48 sps:$4 sm:$0xff]  }
  0x2c   :  { %1925 = vmatpush1.bf16.msra.mxu1 %v5627_v44  ;;  %1856 = vmatprep.subr.bf16.mxu0 %v5631_v46  ;;  %v5718_v44 = vld [vmem:[%s8373_s1 + $0x250] ss:$48 sps:$4 sm:$0xff]   ;;  %v5726_v46 = vld [vmem:[%s8373_s1 + $0x1f4] ss:$48 sps:$4 sm:$0xff]  }
  0x2d   :  { %1926 = vmatprep.subr.bf16.mxu1 %v5635_v47  ;;  %v5729_v47 = vld [vmem:[%s8373_s1 + $0x7f4] ss:$48 sps:$4 sm:$0xff]  }
  0x2f   :  { %1857 = vmatpush2.bf16.msra.mxu0 %v5636_v49  ;;  %v5727_v49 = vld [vmem:[%s8373_s1 + $0x7f0] ss:$48 sps:$4 sm:$0xff]  }
  0x30   :  { %1927 = vmatpush1.bf16.msra.mxu1 %v5633_v48  ;;  %1858 = vmatprep.subr.bf16.mxu0 %v5637_v50  ;;  %v5724_v48 = vld [vmem:[%s8373_s1 + $0x1f0] ss:$48 sps:$4 sm:$0xff]   ;;  %v5732_v50 = vld [vmem:[%s8373_s1 + $0x194] ss:$48 sps:$4 sm:$0xff]  }
  0x31   :  { %1928 = vmatprep.subr.bf16.mxu1 %v5641_v52  ;;  %v5735_v52 = vld [vmem:[%s8373_s1 + $0x794] ss:$48 sps:$4 sm:$0xff]  }
  0x33   :  { %1859 = vmatpush2.bf16.msra.mxu0 %v5642_v54  ;;  %v5733_v54 = vld [vmem:[%s8373_s1 + $0x790] ss:$48 sps:$4 sm:$0xff]  }
  0x34   :  { %1929 = vmatpush1.bf16.msra.mxu1 %v5639_v53  ;;  %1860 = vmatprep.subr.bf16.mxu0 %v5643_v55  ;;  %v5730_v53 = vld [vmem:[%s8373_s1 + $0x190] ss:$48 sps:$4 sm:$0xff]   ;;  %v5738_v55 = vld [vmem:[%s8373_s1 + $0x134] ss:$48 sps:$4 sm:$0xff]  }
  0x35   :  { %1930 = vmatprep.subr.bf16.mxu1 %v5647_v56  ;;  %v5741_v56 = vld [vmem:[%s8373_s1 + $0x734] ss:$48 sps:$4 sm:$0xff]  }
  0x37   :  { %1861 = vmatpush2.bf16.msra.mxu0 %v5648_v58  ;;  %v5739_v58 = vld [vmem:[%s8373_s1 + $0x730] ss:$48 sps:$4 sm:$0xff]  }
  0x38   :  { %1931 = vmatpush1.bf16.msra.mxu1 %v5645_v57  ;;  %1862 = vmatprep.subr.bf16.mxu0 %v5649_v59  ;;  %v5736_v57 = vld [vmem:[%s8373_s1 + $0x130] ss:$48 sps:$4 sm:$0xff]   ;;  %v5744_v59 = vld [vmem:[%s8373_s1 + $0xd4] ss:$48 sps:$4 sm:$0xff]  }
  0x39   :  { %1932 = vmatprep.subr.bf16.mxu1 %v5653_v60  ;;  %v5747_v60 = vld [vmem:[%s8373_s1 + $0x6d4] ss:$48 sps:$4 sm:$0xff]  }
  0x3b   :  { %1863 = vmatpush2.bf16.msra.mxu0 %v5654_v62  ;;  %v5745_v62 = vld [vmem:[%s8373_s1 + $0x6d0] ss:$48 sps:$4 sm:$0xff]  }
  0x3c   :  { %1933 = vmatpush1.bf16.msra.mxu1 %v5651_v61  ;;  %1864 = vmatprep.subr.bf16.mxu0 %v5655_v63  ;;  %v5742_v61 = vld [vmem:[%s8373_s1 + $0xd0] ss:$48 sps:$4 sm:$0xff]   ;;  %v5750_v63 = vld [vmem:[%s8373_s1 + $0x74] ss:$48 sps:$4 sm:$0xff]  }
  0x3d   :  { %1934 = vmatprep.subr.bf16.mxu1 %v5659_v0  ;;  %v5753_v0 = vld [vmem:[%s8373_s1 + $0x674] ss:$48 sps:$4 sm:$0xff]  }
  0x3f   :  { %1865 = vmatpush2.bf16.msra.mxu0 %v5660_v3  ;;  %v5751_v3 = vld [vmem:[%s8373_s1 + $0x670] ss:$48 sps:$4 sm:$0xff]  }
  0x40   :  { %1935 = vmatpush1.bf16.msra.mxu1 %v5657_v1  ;;  %1963 = vmatprep.subr.bf16.mxu0 %v5669_v5  ;;  %v5748_v1 = vld [vmem:[%s8373_s1 + $0x70] ss:$48 sps:$4 sm:$0xff]   ;;  %v5759_v5 = vld [vmem:[%s8373_s1 + $0x614] ss:$48 sps:$4 sm:$0xff]  }
  0x41   :  { %1936 = vmatprep.subr.bf16.mxu1 %v5666_v4  ;;  %v5756_v4 = vld [vmem:[%s8373_s1 + $0x14] ss:$48 sps:$4 sm:$0xff]  }
  0x42   :  { %1867 = vmatmul.mubr.bf16.vlgmr.msra.gmra.mxu0 %v6659_v6 }
  0x43   :  { %1964 = vmatpush1.bf16.msra.mxu0 %v5667_v8  ;;  %1995 = vmatprep.mubr.bf16.mxu0 %v6410_v2  ;;  %v5757_v8 = vld [vmem:[%s8373_s1 + $0x610] ss:$48 sps:$4 sm:$0xff]  }
  0x44   :  { %1937 = vmatpush2.bf16.msra.mxu1 %v5664_v7  ;;  %1965 = vmatprep.subr.bf16.mxu0 %v5675_v10  ;;  %v5754_v7 = vld [vmem:[%s8373_s1 + $0x10] ss:$48 sps:$4 sm:$0xff]   ;;  %v5765_v10 = vld [vmem:[%s8373_s1 + $0x2bc] ss:$48 sps:$4 sm:$0xff]  }
  0x45   :  { %1938 = vmatprep.subr.bf16.mxu1 %v5672_v9  ;;  %v5762_v9 = vld [vmem:[%s8373_s1 + $0x5b4] ss:$48 sps:$4 sm:$0xff]  }
  0x47   :  { %1966 = vmatpush1.bf16.msra.mxu0 %v5673_v12  ;;  %v5763_v12 = vld [vmem:[%s8373_s1 + $0x2b8] ss:$48 sps:$4 sm:$0xff]  }
  0x48   :  { %1939 = vmatpush2.bf16.msra.mxu1 %v5670_v11  ;;  %1967 = vmatprep.subr.bf16.mxu0 %v5681_v14  ;;  %v5760_v11 = vld [vmem:[%s8373_s1 + $0x5b0] ss:$48 sps:$4 sm:$0xff]   ;;  %v5771_v14 = vld [vmem:[%s8373_s1 + $0x25c] ss:$48 sps:$4 sm:$0xff]  }
  0x49   :  { %1940 = vmatprep.subr.bf16.mxu1 %v5678_v13  ;;  %v5768_v13 = vld [vmem:[%s8373_s1 + $0x554] ss:$48 sps:$4 sm:$0xff]  }
  0x4b   :  { %1968 = vmatpush1.bf16.msra.mxu0 %v5679_v16  ;;  %v5769_v16 = vld [vmem:[%s8373_s1 + $0x258] ss:$48 sps:$4 sm:$0xff]  }
  0x4c   :  { %1941 = vmatpush2.bf16.msra.mxu1 %v5676_v15  ;;  %1969 = vmatprep.subr.bf16.mxu0 %v5687_v18  ;;  %v5766_v15 = vld [vmem:[%s8373_s1 + $0x550] ss:$48 sps:$4 sm:$0xff]  }
  0x4d   :  { %1942 = vmatprep.subr.bf16.mxu1 %v5684_v17  ;;  %v5774_v17 = vld [vmem:[%s8373_s1 + $0x4f4] ss:$48 sps:$4 sm:$0xff]   ;;  %v5772_v18 = vld [vmem:[%s8373_s1 + $0x4f0] ss:$48 sps:$4 sm:$0xff]  }
  0x4f   :  { %1970 = vmatpush1.bf16.msra.mxu0 %v5685_v20  ;;  %v5780_v20 = vld [vmem:[%s8373_s1 + $0x494] ss:$48 sps:$4 sm:$0xff]  }
  0x50   :  { %1943 = vmatpush2.bf16.msra.mxu1 %v5682_v19  ;;  %1971 = vmatprep.subr.bf16.mxu0 %v5693_v22  ;;  %v5775_v19 = vld [vmem:[%s8373_s1 + $0x1f8] ss:$48 sps:$4 sm:$0xff]  }
  0x51   :  { %1944 = vmatprep.subr.bf16.mxu1 %v5690_v21  ;;  %v5778_v21 = vld [vmem:[%s8373_s1 + $0x490] ss:$48 sps:$4 sm:$0xff]   ;;  %v5781_v22 = vld [vmem:[%s8373_s1 + $0x198] ss:$48 sps:$4 sm:$0xff]  }
  0x53   :  { %1972 = vmatpush1.bf16.msra.mxu0 %v5691_v24  ;;  %v5789_v24 = vld [vmem:[%s8373_s1 + $0x13c] ss:$48 sps:$4 sm:$0xff]  }
  0x54   :  { %1945 = vmatpush2.bf16.msra.mxu1 %v5688_v23  ;;  %1973 = vmatprep.subr.bf16.mxu0 %v5699_v26  ;;  %v5786_v23 = vld [vmem:[%s8373_s1 + $0x434] ss:$48 sps:$4 sm:$0xff]   ;;  %v5787_v26 = vld [vmem:[%s8373_s1 + $0x138] ss:$48 sps:$4 sm:$0xff]  }
  0x55   :  { %1946 = vmatprep.subr.bf16.mxu1 %v5696_v25  ;;  %v5784_v25 = vld [vmem:[%s8373_s1 + $0x430] ss:$48 sps:$4 sm:$0xff]  }
  0x57   :  { %1974 = vmatpush1.bf16.msra.mxu0 %v5697_v28  ;;  %v5795_v28 = vld [vmem:[%s8373_s1 + $0xdc] ss:$48 sps:$4 sm:$0xff]  }
  0x58   :  { %1947 = vmatpush2.bf16.msra.mxu1 %v5694_v27  ;;  %1975 = vmatprep.subr.bf16.mxu0 %v5705_v30  ;;  %v5792_v27 = vld [vmem:[%s8373_s1 + $0x3d4] ss:$48 sps:$4 sm:$0xff]   ;;  %v5793_v30 = vld [vmem:[%s8373_s1 + $0xd8] ss:$48 sps:$4 sm:$0xff]  }
  0x59   :  { %1948 = vmatprep.subr.bf16.mxu1 %v5702_v29  ;;  %v5790_v29 = vld [vmem:[%s8373_s1 + $0x3d0] ss:$48 sps:$4 sm:$0xff]  }
  0x5b   :  { %1976 = vmatpush1.bf16.msra.mxu0 %v5703_v32  ;;  %v5801_v32 = vld [vmem:[%s8373_s1 + $0x7c] ss:$48 sps:$4 sm:$0xff]  }
  0x5c   :  { %1949 = vmatpush2.bf16.msra.mxu1 %v5700_v31  ;;  %1977 = vmatprep.subr.bf16.mxu0 %v5711_v34  ;;  %v5798_v31 = vld [vmem:[%s8373_s1 + $0x374] ss:$48 sps:$4 sm:$0xff]   ;;  %v5799_v34 = vld [vmem:[%s8373_s1 + $0x78] ss:$48 sps:$4 sm:$0xff]  }
  0x5d   :  { %1950 = vmatprep.subr.bf16.mxu1 %v5708_v33  ;;  %v5796_v33 = vld [vmem:[%s8373_s1 + $0x370] ss:$48 sps:$4 sm:$0xff]  }
  0x5f   :  { %1978 = vmatpush1.bf16.msra.mxu0 %v5709_v37  ;;  %v5807_v37 = vld [vmem:[%s8373_s1 + $0x1c] ss:$48 sps:$4 sm:$0xff]  }
  0x60   :  { %1951 = vmatpush2.bf16.msra.mxu1 %v5706_v36  ;;  %2006 = vmatprep.subr.bf16.mxu0 %v5714_v38  ;;  %v5804_v36 = vld [vmem:[%s8373_s1 + $0x314] ss:$48 sps:$4 sm:$0xff]   ;;  %v5802_v38 = vld [vmem:[%s8373_s1 + $0x310] ss:$48 sps:$4 sm:$0xff]  }
  0x61   :  { %2049 = vmatprep.subr.bf16.mxu1 %v5717_v39  ;;  %v5805_v39 = vld [vmem:[%s8373_s1 + $0x18] ss:$48 sps:$4 sm:$0xff]  }
  0x62   :  { %1996 = vmatmul.mubr.bf16.vlgmr.msra.gmra.mxu0 %v6550_v35 }
  0x63   :  { %1953 = vmatmul.mubr.bf16.vlgmr.msra.gmra.mxu1 %v6659_v6  ;;  %2007 = vmatpush1.bf16.msra.mxu0 %v5712_v40  ;;  %v5810_v40 = vld [vmem:[%s8373_s1 + $0x5bc] ss:$48 sps:$4 sm:$0xff]  }
  0x64   :  { %2050 = vmatpush1.bf16.msra.mxu1 %v5715_v41  ;;  %2008 = vmatprep.subr.bf16.mxu0 %v5720_v42  ;;  %v5813_v41 = vld [vmem:[%s8373_s1 + $0x8bc] ss:$48 sps:$4 sm:$0xff]   ;;  %v5808_v42 = vld [vmem:[%s8373_s1 + $0x5b8] ss:$48 sps:$4 sm:$0xff]  }
  0x65   :  { %2051 = vmatprep.subr.bf16.mxu1 %v5723_v43  ;;  %2081 = vmatprep.mubr.bf16.mxu1 %v6410_v2  ;;  %v5811_v43 = vld [vmem:[%s8373_s1 + $0x8b8] ss:$48 sps:$4 sm:$0xff]  }
  0x66   :  { %2038 = vmatprep.mubr.bf16.mxu0 %v6601_v51 }
  0x67   :  { %2009 = vmatpush1.bf16.msra.mxu0 %v5718_v44  ;;  %v5816_v44 = vld [vmem:[%s8373_s1 + $0x55c] ss:$48 sps:$4 sm:$0xff]  }
  0x68   :  { %2052 = vmatpush1.bf16.msra.mxu1 %v5721_v45  ;;  %2010 = vmatprep.subr.bf16.mxu0 %v5726_v46  ;;  %v5819_v45 = vld [vmem:[%s8373_s1 + $0x85c] ss:$48 sps:$4 sm:$0xff]   ;;  %v5814_v46 = vld [vmem:[%s8373_s1 + $0x558] ss:$48 sps:$4 sm:$0xff]  }
  0x69   :  { %2053 = vmatprep.subr.bf16.mxu1 %v5729_v47  ;;  %v5817_v47 = vld [vmem:[%s8373_s1 + $0x858] ss:$48 sps:$4 sm:$0xff]  }
  0x6b   :  { %2011 = vmatpush1.bf16.msra.mxu0 %v5724_v48  ;;  %v5822_v48 = vld [vmem:[%s8373_s1 + $0x4fc] ss:$48 sps:$4 sm:$0xff]  }
  0x6c   :  { %2054 = vmatpush1.bf16.msra.mxu1 %v5727_v49  ;;  %2012 = vmatprep.subr.bf16.mxu0 %v5732_v50  ;;  %v5825_v49 = vld [vmem:[%s8373_s1 + $0x7fc] ss:$48 sps:$4 sm:$0xff]   ;;  %v5820_v50 = vld [vmem:[%s8373_s1 + $0x4f8] ss:$48 sps:$4 sm:$0xff]  }
  0x6d   :  { %2055 = vmatprep.subr.bf16.mxu1 %v5735_v52  ;;  %v5823_v52 = vld [vmem:[%s8373_s1 + $0x7f8] ss:$48 sps:$4 sm:$0xff]  }
  0x6f   :  { %2013 = vmatpush1.bf16.msra.mxu0 %v5730_v53  ;;  %v5828_v53 = vld [vmem:[%s8373_s1 + $0x49c] ss:$48 sps:$4 sm:$0xff]  }
  0x70   :  { %2056 = vmatpush1.bf16.msra.mxu1 %v5733_v54  ;;  %2014 = vmatprep.subr.bf16.mxu0 %v5738_v55  ;;  %v5831_v54 = vld [vmem:[%s8373_s1 + $0x79c] ss:$48 sps:$4 sm:$0xff]   ;;  %v5826_v55 = vld [vmem:[%s8373_s1 + $0x498] ss:$48 sps:$4 sm:$0xff]  }
  0x71   :  { %2057 = vmatprep.subr.bf16.mxu1 %v5741_v56  ;;  %v5829_v56 = vld [vmem:[%s8373_s1 + $0x798] ss:$48 sps:$4 sm:$0xff]  }
  0x73   :  { %2015 = vmatpush1.bf16.msra.mxu0 %v5736_v57  ;;  %v5834_v57 = vld [vmem:[%s8373_s1 + $0x43c] ss:$48 sps:$4 sm:$0xff]  }
  0x74   :  { %2058 = vmatpush1.bf16.msra.mxu1 %v5739_v58  ;;  %2016 = vmatprep.subr.bf16.mxu0 %v5744_v59  ;;  %v5837_v58 = vld [vmem:[%s8373_s1 + $0x73c] ss:$48 sps:$4 sm:$0xff]   ;;  %v5832_v59 = vld [vmem:[%s8373_s1 + $0x438] ss:$48 sps:$4 sm:$0xff]  }
  0x75   :  { %2059 = vmatprep.subr.bf16.mxu1 %v5747_v60  ;;  %v5835_v60 = vld [vmem:[%s8373_s1 + $0x738] ss:$48 sps:$4 sm:$0xff]  }
  0x77   :  { %2017 = vmatpush1.bf16.msra.mxu0 %v5742_v61  ;;  %v5840_v61 = vld [vmem:[%s8373_s1 + $0x3dc] ss:$48 sps:$4 sm:$0xff]  }
  0x78   :  { %2060 = vmatpush1.bf16.msra.mxu1 %v5745_v62  ;;  %2018 = vmatprep.subr.bf16.mxu0 %v5750_v63  ;;  %v5843_v62 = vld [vmem:[%s8373_s1 + $0x6dc] ss:$48 sps:$4 sm:$0xff]   ;;  %v5838_v63 = vld [vmem:[%s8373_s1 + $0x3d8] ss:$48 sps:$4 sm:$0xff]  }
  0x79   :  { %2061 = vmatprep.subr.bf16.mxu1 %v5753_v0  ;;  %v5841_v0 = vld [vmem:[%s8373_s1 + $0x6d8] ss:$48 sps:$4 sm:$0xff]  }
  0x7b   :  { %2019 = vmatpush1.bf16.msra.mxu0 %v5748_v1  ;;  %v5846_v1 = vld [vmem:[%s8373_s1 + $0x37c] ss:$48 sps:$4 sm:$0xff]  }
  0x7c   :  { %2062 = vmatpush1.bf16.msra.mxu1 %v5751_v3  ;;  %2020 = vmatprep.subr.bf16.mxu0 %v5756_v4  ;;  %v5849_v3 = vld [vmem:[%s8373_s1 + $0x67c] ss:$48 sps:$4 sm:$0xff]   ;;  %v5844_v4 = vld [vmem:[%s8373_s1 + $0x378] ss:$48 sps:$4 sm:$0xff]  }
  0x7d   :  { %2063 = vmatprep.subr.bf16.mxu1 %v5759_v5  ;;  %v5847_v5 = vld [vmem:[%s8373_s1 + $0x678] ss:$48 sps:$4 sm:$0xff]  }
  0x7f   :  { %2021 = vmatpush1.bf16.msra.mxu0 %v5754_v7  ;;  %v5852_v7 = vld [vmem:[%s8373_s1 + $0x31c] ss:$48 sps:$4 sm:$0xff]  }
  0x80   :  { %2064 = vmatpush1.bf16.msra.mxu1 %v5757_v8  ;;  %2022 = vmatprep.subr.bf16.mxu0 %v5762_v9  ;;  %v5855_v8 = vld [vmem:[%s8373_s1 + $0x61c] ss:$48 sps:$4 sm:$0xff]   ;;  %v5850_v9 = vld [vmem:[%s8373_s1 + $0x318] ss:$48 sps:$4 sm:$0xff]  }
  0x81   :  { %2092 = vmatprep.subr.bf16.mxu1 %v5765_v10  ;;  %v5853_v10 = vld [vmem:[%s8373_s1 + $0x618] ss:$48 sps:$4 sm:$0xff]  }
  0x83   :  { %2082 = vmatmul.mubr.bf16.vlgmr.msra.gmra.mxu1 %v6550_v35  ;;  %2023 = vmatpush2.bf16.msra.mxu0 %v5760_v11  ;;  %v5777_v35 = vld [vmem:[%s8373_s1 + $0x1fc] ss:$48 sps:$4 sm:$0xff]   ;;  %v5858_v11 = vld [vmem:[%s8373_s1 + $0x2c4] ss:$48 sps:$4 sm:$0xff]  }
  0x84   :  { %2093 = vmatpush1.bf16.msra.mxu1 %v5763_v12  ;;  %2024 = vmatprep.subr.bf16.mxu0 %v5768_v13  ;;  %v5861_v12 = vld [vmem:[%s8373_s1 + $0x8c4] ss:$48 sps:$4 sm:$0xff]   ;;  %v5856_v13 = vld [vmem:[%s8373_s1 + $0x2c0] ss:$48 sps:$4 sm:$0xff]  }
  0x85   :  { %2094 = vmatprep.subr.bf16.mxu1 %v5771_v14  ;;  %2124 = vmatprep.mubr.bf16.mxu1 %v6601_v51  ;;  %v5783_v51 = vld [vmem:[%s8373_s1 + $0x19c] ss:$48 sps:$4 sm:$0xff]   ;;  %v5859_v14 = vld [vmem:[%s8373_s1 + $0x8c0] ss:$48 sps:$4 sm:$0xff]  }
  0x87   :  { %2025 = vmatpush2.bf16.msra.mxu0 %v5766_v15  ;;  %v5864_v15 = vld [vmem:[%s8373_s1 + $0x264] ss:$48 sps:$4 sm:$0xff]  }
  0x88   :  { %2095 = vmatpush1.bf16.msra.mxu1 %v5769_v16  ;;  %2026 = vmatprep.subr.bf16.mxu0 %v5774_v17  ;;  %v5867_v16 = vld [vmem:[%s8373_s1 + $0x864] ss:$48 sps:$4 sm:$0xff]  }
  0x89   :  { %2096 = vmatprep.subr.bf16.mxu1 %v5777_v35  ;;  %v7071_v17 = vld [vmem:[%s8372_s0 + $0x8] ss:$12 sps:$4 sm:$0xff]   ;;  %v5862_v35 = vld [vmem:[%s8373_s1 + $0x260] ss:$48 sps:$4 sm:$0xff]  }
  0x8b   :  { %2027 = vmatpush2.bf16.msra.mxu0 %v5772_v18  ;;  %v5865_v18 = vld [vmem:[%s8373_s1 + $0x860] ss:$48 sps:$4 sm:$0xff]  }
  0x8c   :  { %2097 = vmatpush1.bf16.msra.mxu1 %v5775_v19  ;;  %2028 = vmatprep.subr.bf16.mxu0 %v5780_v20  ;;  %v5873_v19 = vld [vmem:[%s8373_s1 + $0x804] ss:$48 sps:$4 sm:$0xff]  }
  0x8d   :  { %2098 = vmatprep.subr.bf16.mxu1 %v5783_v51  ;;  %v7090_v20 = vld [vmem:[%s8372_s0 + $0x4] ss:$12 sps:$4 sm:$0xff]  }
  0x8e   :  { %v5868_v51 = vld [vmem:[%s8373_s1 + $0x200] ss:$48 sps:$4 sm:$0xff]  }
  0x8f   :  { %2029 = vmatpush2.bf16.msra.mxu0 %v5778_v21  ;;  %v5871_v21 = vld [vmem:[%s8373_s1 + $0x800] ss:$48 sps:$4 sm:$0xff]  }
  0x90   :  { %2099 = vmatpush1.bf16.msra.mxu1 %v5781_v22  ;;  %2030 = vmatprep.subr.bf16.mxu0 %v5786_v23  ;;  %v5876_v22 = vld [vmem:[%s8373_s1 + $0x1a4] ss:$48 sps:$4 sm:$0xff]  }
  0x91   :  { %2100 = vmatprep.subr.bf16.mxu1 %v5789_v24  ;;  %v5879_v23 = vld [vmem:[%s8373_s1 + $0x7a4] ss:$48 sps:$4 sm:$0xff]   ;;  %v5874_v24 = vld [vmem:[%s8373_s1 + $0x1a0] ss:$48 sps:$4 sm:$0xff]  }
  0x93   :  { %2031 = vmatpush2.bf16.msra.mxu0 %v5784_v25  ;;  %v5877_v25 = vld [vmem:[%s8373_s1 + $0x7a0] ss:$48 sps:$4 sm:$0xff]  }
  0x94   :  { %2101 = vmatpush1.bf16.msra.mxu1 %v5787_v26  ;;  %2032 = vmatprep.subr.bf16.mxu0 %v5792_v27  ;;  %v5882_v26 = vld [vmem:[%s8373_s1 + $0x144] ss:$48 sps:$4 sm:$0xff]  }
  0x95   :  { %2102 = vmatprep.subr.bf16.mxu1 %v5795_v28  ;;  %v5885_v27 = vld [vmem:[%s8373_s1 + $0x744] ss:$48 sps:$4 sm:$0xff]   ;;  %v5880_v28 = vld [vmem:[%s8373_s1 + $0x140] ss:$48 sps:$4 sm:$0xff]  }
  0x97   :  { %2033 = vmatpush2.bf16.msra.mxu0 %v5790_v29  ;;  %v5883_v29 = vld [vmem:[%s8373_s1 + $0x740] ss:$48 sps:$4 sm:$0xff]  }
  0x98   :  { %2103 = vmatpush1.bf16.msra.mxu1 %v5793_v30  ;;  %2034 = vmatprep.subr.bf16.mxu0 %v5798_v31  ;;  %v5888_v30 = vld [vmem:[%s8373_s1 + $0xe4] ss:$48 sps:$4 sm:$0xff]  }
  0x99   :  { %2104 = vmatprep.subr.bf16.mxu1 %v5801_v32  ;;  %v5891_v31 = vld [vmem:[%s8373_s1 + $0x6e4] ss:$48 sps:$4 sm:$0xff]   ;;  %v5886_v32 = vld [vmem:[%s8373_s1 + $0xe0] ss:$48 sps:$4 sm:$0xff]  }
  0x9b   :  { %2035 = vmatpush2.bf16.msra.mxu0 %v5796_v33  ;;  %v5889_v33 = vld [vmem:[%s8373_s1 + $0x6e0] ss:$48 sps:$4 sm:$0xff]  }
  0x9c   :  { %2105 = vmatpush1.bf16.msra.mxu1 %v5799_v34  ;;  %2036 = vmatprep.subr.bf16.mxu0 %v5804_v36  ;;  %v5894_v34 = vld [vmem:[%s8373_s1 + $0x84] ss:$48 sps:$4 sm:$0xff]  }
  0x9d   :  { %2106 = vmatprep.subr.bf16.mxu1 %v5807_v37  ;;  %v5897_v36 = vld [vmem:[%s8373_s1 + $0x684] ss:$48 sps:$4 sm:$0xff]   ;;  %v5892_v37 = vld [vmem:[%s8373_s1 + $0x80] ss:$48 sps:$4 sm:$0xff]  }
  0x9f   :  { %2037 = vmatpush2.bf16.msra.mxu0 %v5802_v38  ;;  %v5895_v38 = vld [vmem:[%s8373_s1 + $0x680] ss:$48 sps:$4 sm:$0xff]  }
  0xa0   :  { %2107 = vmatpush1.bf16.msra.mxu1 %v5805_v39  ;;  %2135 = vmatprep.subr.bf16.mxu0 %v5813_v41  ;;  %v5900_v39 = vld [vmem:[%s8373_s1 + $0x24] ss:$48 sps:$4 sm:$0xff]   ;;  %v5898_v41 = vld [vmem:[%s8373_s1 + $0x20] ss:$48 sps:$4 sm:$0xff]  }
  0xa1   :  { %2108 = vmatprep.subr.bf16.mxu1 %v5810_v40  ;;  %v5903_v40 = vld [vmem:[%s8373_s1 + $0x624] ss:$48 sps:$4 sm:$0xff]  }
  0xa2   :  { %2039 = vmatmul.mubr.bf16.vlgmr.msra.gmra.mxu0 %v6659_v6 }
  0xa3   :  { %2136 = vmatpush1.bf16.msra.mxu0 %v5811_v43  ;;  %2167 = vmatprep.mubr.bf16.mxu0 %v6410_v2  ;;  %v5906_v43 = vld [vmem:[%s8373_s1 + $0x5c4] ss:$48 sps:$4 sm:$0xff]  }
  0xa4   :  { %2109 = vmatpush2.bf16.msra.mxu1 %v5808_v42  ;;  %2137 = vmatprep.subr.bf16.mxu0 %v5819_v45  ;;  %v5901_v42 = vld [vmem:[%s8373_s1 + $0x620] ss:$48 sps:$4 sm:$0xff]  }
  0xa5   :  { %2110 = vmatprep.subr.bf16.mxu1 %v5816_v44  ;;  %v5909_v44 = vld [vmem:[%s8373_s1 + $0x2cc] ss:$48 sps:$4 sm:$0xff]   ;;  %v5904_v45 = vld [vmem:[%s8373_s1 + $0x5c0] ss:$48 sps:$4 sm:$0xff]  }
  0xa7   :  { %2138 = vmatpush1.bf16.msra.mxu0 %v5817_v47  ;;  %v5912_v47 = vld [vmem:[%s8373_s1 + $0x564] ss:$48 sps:$4 sm:$0xff]  }
  0xa8   :  { %2111 = vmatpush2.bf16.msra.mxu1 %v5814_v46  ;;  %2139 = vmatprep.subr.bf16.mxu0 %v5825_v49  ;;  %v5907_v46 = vld [vmem:[%s8373_s1 + $0x2c8] ss:$48 sps:$4 sm:$0xff]   ;;  %v5910_v49 = vld [vmem:[%s8373_s1 + $0x560] ss:$48 sps:$4 sm:$0xff]  }
  0xa9   :  { %2112 = vmatprep.subr.bf16.mxu1 %v5822_v48  ;;  %v5915_v48 = vld [vmem:[%s8373_s1 + $0x26c] ss:$48 sps:$4 sm:$0xff]  }
  0xab   :  { %2140 = vmatpush1.bf16.msra.mxu0 %v5823_v52  ;;  %v5918_v52 = vld [vmem:[%s8373_s1 + $0x504] ss:$48 sps:$4 sm:$0xff]  }
  0xac   :  { %2113 = vmatpush2.bf16.msra.mxu1 %v5820_v50  ;;  %2141 = vmatprep.subr.bf16.mxu0 %v5831_v54  ;;  %v5913_v50 = vld [vmem:[%s8373_s1 + $0x268] ss:$48 sps:$4 sm:$0xff]   ;;  %v5916_v54 = vld [vmem:[%s8373_s1 + $0x500] ss:$48 sps:$4 sm:$0xff]  }
  0xad   :  { %2114 = vmatprep.subr.bf16.mxu1 %v5828_v53  ;;  %v5921_v53 = vld [vmem:[%s8373_s1 + $0x20c] ss:$48 sps:$4 sm:$0xff]  }
  0xaf   :  { %2142 = vmatpush1.bf16.msra.mxu0 %v5829_v56  ;;  %v5924_v56 = vld [vmem:[%s8373_s1 + $0x4a4] ss:$48 sps:$4 sm:$0xff]  }
  0xb0   :  { %2115 = vmatpush2.bf16.msra.mxu1 %v5826_v55  ;;  %2143 = vmatprep.subr.bf16.mxu0 %v5837_v58  ;;  %v5919_v55 = vld [vmem:[%s8373_s1 + $0x208] ss:$48 sps:$4 sm:$0xff]   ;;  %v5922_v58 = vld [vmem:[%s8373_s1 + $0x4a0] ss:$48 sps:$4 sm:$0xff]  }
  0xb1   :  { %2116 = vmatprep.subr.bf16.mxu1 %v5834_v57  ;;  %v5927_v57 = vld [vmem:[%s8373_s1 + $0x1ac] ss:$48 sps:$4 sm:$0xff]  }
  0xb3   :  { %2144 = vmatpush1.bf16.msra.mxu0 %v5835_v60  ;;  %v5930_v60 = vld [vmem:[%s8373_s1 + $0x444] ss:$48 sps:$4 sm:$0xff]  }
  0xb4   :  { %2117 = vmatpush2.bf16.msra.mxu1 %v5832_v59  ;;  %2145 = vmatprep.subr.bf16.mxu0 %v5843_v62  ;;  %v5925_v59 = vld [vmem:[%s8373_s1 + $0x1a8] ss:$48 sps:$4 sm:$0xff]   ;;  %v5928_v62 = vld [vmem:[%s8373_s1 + $0x440] ss:$48 sps:$4 sm:$0xff]  }
  0xb5   :  { %2118 = vmatprep.subr.bf16.mxu1 %v5840_v61  ;;  %v5933_v61 = vld [vmem:[%s8373_s1 + $0x14c] ss:$48 sps:$4 sm:$0xff]  }
  0xb7   :  { %2146 = vmatpush1.bf16.msra.mxu0 %v5841_v0  ;;  %v5936_v0 = vld [vmem:[%s8373_s1 + $0x3e4] ss:$48 sps:$4 sm:$0xff]  }
  0xb8   :  { %2119 = vmatpush2.bf16.msra.mxu1 %v5838_v63  ;;  %2147 = vmatprep.subr.bf16.mxu0 %v5849_v3  ;;  %v5931_v63 = vld [vmem:[%s8373_s1 + $0x148] ss:$48 sps:$4 sm:$0xff]   ;;  %v5934_v3 = vld [vmem:[%s8373_s1 + $0x3e0] ss:$48 sps:$4 sm:$0xff]  }
  0xb9   :  { %2120 = vmatprep.subr.bf16.mxu1 %v5846_v1  ;;  %v5939_v1 = vld [vmem:[%s8373_s1 + $0xec] ss:$48 sps:$4 sm:$0xff]  }
  0xbb   :  { %2148 = vmatpush1.bf16.msra.mxu0 %v5847_v5  ;;  %v5942_v5 = vld [vmem:[%s8373_s1 + $0x384] ss:$48 sps:$4 sm:$0xff]  }
  0xbc   :  { %2121 = vmatpush2.bf16.msra.mxu1 %v5844_v4  ;;  %2149 = vmatprep.subr.bf16.mxu0 %v5855_v8  ;;  %v5937_v4 = vld [vmem:[%s8373_s1 + $0xe8] ss:$48 sps:$4 sm:$0xff]   ;;  %v5945_v8 = vld [vmem:[%s8373_s1 + $0x8c] ss:$48 sps:$4 sm:$0xff]  }
  0xbd   :  { %2122 = vmatprep.subr.bf16.mxu1 %v5852_v7  ;;  %v318_v7 = vlaneseq }
  0xbf   :  { %2150 = vmatpush1.bf16.msra.mxu0 %v5853_v10  ;;  %v5943_v10 = vld [vmem:[%s8373_s1 + $0x88] ss:$48 sps:$4 sm:$0xff]  }
  0xc0   :  { %2123 = vmatpush2.bf16.msra.mxu1 %v5850_v9  ;;  %2178 = vmatprep.subr.bf16.mxu0 %v5858_v11  ;;  %v5940_v9 = vld [vmem:[%s8373_s1 + $0x380] ss:$48 sps:$4 sm:$0xff]   ;;  %v5948_v11 = vld [vmem:[%s8373_s1 + $0x324] ss:$48 sps:$4 sm:$0xff]  }
  0xc1   :  { %2221 = vmatprep.subr.bf16.mxu1 %v5861_v12  ;;  %v7248_v12 = vshrl.u32 %v318_v7, 7  ;;  %v5994_v7 = vld [vmem:[%s8373_s1 + $0x328] ss:$48 sps:$4 sm:$0xff]  }
  0xc2   :  { %2168 = vmatmul.mubr.bf16.vlgmr.msra.gmra.mxu0 %v7071_v17 }
  0xc3   :  { %2125 = vmatmul.mubr.bf16.vlgmr.msra.gmra.mxu1 %v6659_v6  ;;  %2179 = vmatpush1.bf16.msra.mxu0 %v5856_v13  ;;  %v5870_v6 = vld [vmem:[%s8373_s1 + $0x204] ss:$48 sps:$4 sm:$0xff]   ;;  %v5951_v13 = vld [vmem:[%s8373_s1 + $0x2c] ss:$48 sps:$4 sm:$0xff]  }
  0xc4   :  { %2222 = vmatpush1.bf16.msra.mxu1 %v5859_v14  ;;  %2180 = vmatprep.subr.bf16.mxu0 %v5864_v15  ;;  %v5946_v14 = vld [vmem:[%s8373_s1 + $0x320] ss:$48 sps:$4 sm:$0xff]   ;;  %v5949_v15 = vld [vmem:[%s8373_s1 + $0x28] ss:$48 sps:$4 sm:$0xff]  }
  0xc5   :  { %2223 = vmatprep.subr.bf16.mxu1 %v5867_v16  ;;  %2253 = vmatprep.mubr.bf16.mxu1 %v6410_v2  ;;  %v7262_v16 = vld [vmem:[%s8374_s2] sm:$0xff] }
  0xc6   :  { %2210 = vmatprep.mubr.bf16.mxu0 %v7090_v20 }
  0xc7   :  { %2181 = vmatpush1.bf16.msra.mxu0 %v5862_v35  ;;  %v7265_v35 = vsub.s32 0, %v7248_v12 }
  0xc8   :  { %2224 = vmatpush1.bf16.msra.mxu1 %v5865_v18  ;;  %2182 = vmatprep.subr.bf16.mxu0 %v5870_v6  ;;  %v5954_v18 = vld [vmem:[%s8373_s1 + $0x5cc] ss:$48 sps:$4 sm:$0xff]  }
  0xc9   :  { %2225 = vmatprep.subr.bf16.mxu1 %v5873_v19  ;;  %v5957_v6 = vld [vmem:[%s8373_s1 + $0x8cc] ss:$48 sps:$4 sm:$0xff]   ;;  %v5952_v19 = vld [vmem:[%s8373_s1 + $0x5c8] ss:$48 sps:$4 sm:$0xff]  }
  0xcb   :  { %2183 = vmatpush1.bf16.msra.mxu0 %v5868_v51  ;;  %v321_v51 = vrot.slane %v7262_v16, %v7265_v35 }
  0xcc   :  { %2226 = vmatpush1.bf16.msra.mxu1 %v5871_v21  ;;  %2184 = vmatprep.subr.bf16.mxu0 %v5876_v22  ;;  %v5960_v21 = vld [vmem:[%s8373_s1 + $0x56c] ss:$48 sps:$4 sm:$0xff]  }
  0xcd   :  { %2227 = vmatprep.subr.bf16.mxu1 %v5879_v23  ;;  %v5963_v23 = vld [vmem:[%s8373_s1 + $0x86c] ss:$48 sps:$4 sm:$0xff]  }
  0xcf   :  { %2185 = vmatpush1.bf16.msra.mxu0 %v5874_v24 }
  0xd0   :  { %2228 = vmatpush1.bf16.msra.mxu1 %v5877_v25  ;;  %2186 = vmatprep.subr.bf16.mxu0 %v5882_v26  ;;  %v7290_v25 = vld [vmem:[%s8372_s0] ss:$12 sps:$4 sm:$0xff]   ;;  %v5958_v26 = vld [vmem:[%s8373_s1 + $0x568] ss:$48 sps:$4 sm:$0xff]  }
  0xd1   :  { %2229 = vmatprep.subr.bf16.mxu1 %v5885_v27  ;;  %v5961_v27 = vld [vmem:[%s8373_s1 + $0x868] ss:$48 sps:$4 sm:$0xff]  }
  0xd3   :  { %2187 = vmatpush1.bf16.msra.mxu0 %v5880_v28 }
  0xd4   :  { %2230 = vmatpush1.bf16.msra.mxu1 %v5883_v29  ;;  %2188 = vmatprep.subr.bf16.mxu0 %v5888_v30  ;;  %v5966_v29 = vld [vmem:[%s8373_s1 + $0x50c] ss:$48 sps:$4 sm:$0xff]  }
  0xd5   :  { %2231 = vmatprep.subr.bf16.mxu1 %v5891_v31 }
  0xd7   :  { %2189 = vmatpush1.bf16.msra.mxu0 %v5886_v32  ;;  %v5969_v32 = vld [vmem:[%s8373_s1 + $0x80c] ss:$48 sps:$4 sm:$0xff]  }
  0xd8   :  { %2232 = vmatpush1.bf16.msra.mxu1 %v5889_v33  ;;  %2190 = vmatprep.subr.bf16.mxu0 %v5894_v34  ;;  %v5964_v34 = vld [vmem:[%s8373_s1 + $0x508] ss:$48 sps:$4 sm:$0xff]  }
  0xd9   :  { %2233 = vmatprep.subr.bf16.mxu1 %v5897_v36 }
  0xdb   :  { %2191 = vmatpush1.bf16.msra.mxu0 %v5892_v37  ;;  %v5967_v37 = vld [vmem:[%s8373_s1 + $0x808] ss:$48 sps:$4 sm:$0xff]  }
  0xdc   :  { %2234 = vmatpush1.bf16.msra.mxu1 %v5895_v38  ;;  %2192 = vmatprep.subr.bf16.mxu0 %v5900_v39  ;;  %v5972_v38 = vld [vmem:[%s8373_s1 + $0x4ac] ss:$48 sps:$4 sm:$0xff]  }
  0xdd   :  { %2235 = vmatprep.subr.bf16.mxu1 %v5903_v40  ;;  %v5975_v39 = vld [vmem:[%s8373_s1 + $0x7ac] ss:$48 sps:$4 sm:$0xff]  }
  0xdf   :  { %2193 = vmatpush1.bf16.msra.mxu0 %v5898_v41 }
  0xe0   :  { %2236 = vmatpush1.bf16.msra.mxu1 %v5901_v42  ;;  %2194 = vmatprep.subr.bf16.mxu0 %v5906_v43  ;;  %v5970_v42 = vld [vmem:[%s8373_s1 + $0x4a8] ss:$48 sps:$4 sm:$0xff]  }
  0xe1   :  { %2264 = vmatprep.subr.bf16.mxu1 %v5909_v44  ;;  %v5973_v43 = vld [vmem:[%s8373_s1 + $0x7a8] ss:$48 sps:$4 sm:$0xff]   ;;  %v5978_v44 = vld [vmem:[%s8373_s1 + $0x44c] ss:$48 sps:$4 sm:$0xff]  }
  0xe3   :  { %2254 = vmatmul.mubr.bf16.vlgmr.msra.gmra.mxu1 %v7071_v17  ;;  %2195 = vmatpush2.bf16.msra.mxu0 %v5904_v45  ;;  %v1911_v22 = vpop.f32.mrf.mxu1  ;;  %v5981_v45 = vld [vmem:[%s8373_s1 + $0x74c] ss:$48 sps:$4 sm:$0xff]  }
  0xe4   :  { %2265 = vmatpush1.bf16.msra.mxu1 %v5907_v46  ;;  %2196 = vmatprep.subr.bf16.mxu0 %v5912_v47 }
  0xe5   :  { %2266 = vmatprep.subr.bf16.mxu1 %v5915_v48  ;;  %2296 = vmatprep.mubr.bf16.mxu1 %v7090_v20  ;;  %v5955_v20 = vld [vmem:[%s8373_s1 + $0x8c8] ss:$48 sps:$4 sm:$0xff]   ;;  %v7302_v30 = vpop.f32.mrf.mxu1 }
  0xe7   :  { %2197 = vmatpush2.bf16.msra.mxu0 %v5910_v49  ;;  %v1915_v41 = vpop.f32.mrf.mxu1  ;;  %v5976_v49 = vld [vmem:[%s8373_s1 + $0x448] ss:$48 sps:$4 sm:$0xff]  }
  0xe8   :  { %2267 = vmatpush1.bf16.msra.mxu1 %v5913_v50  ;;  %2198 = vmatprep.subr.bf16.mxu0 %v5918_v52  ;;  %v5979_v50 = vld [vmem:[%s8373_s1 + $0x748] ss:$48 sps:$4 sm:$0xff]   ;;  %v5984_v52 = vld [vmem:[%s8373_s1 + $0x3ec] ss:$48 sps:$4 sm:$0xff]  }
  0xe9   :  { %2268 = vmatprep.subr.bf16.mxu1 %v5921_v53  ;;  %v5987_v53 = vld [vmem:[%s8373_s1 + $0x6ec] ss:$48 sps:$4 sm:$0xff]  }
  0xeb   :  { %2199 = vmatpush2.bf16.msra.mxu0 %v5916_v54  ;;  %v7347_v54 = vsub.s32 1, %v7248_v12 }
  0xec   :  { %2269 = vmatpush1.bf16.msra.mxu1 %v5919_v55  ;;  %2200 = vmatprep.subr.bf16.mxu0 %v5924_v56  ;;  %v5982_v55 = vld [vmem:[%s8373_s1 + $0x3e8] ss:$48 sps:$4 sm:$0xff]  }
  0xed   :  { %2270 = vmatprep.subr.bf16.mxu1 %v5927_v57  ;;  %v5985_v57 = vld [vmem:[%s8373_s1 + $0x6e8] ss:$48 sps:$4 sm:$0xff]  }
  0xef   :  { %2201 = vmatpush2.bf16.msra.mxu0 %v5922_v58  ;;  %v325_v58 = vrot.slane %v7262_v16, %v7347_v54 }
  0xf0   :  { %2271 = vmatpush1.bf16.msra.mxu1 %v5925_v59  ;;  %2202 = vmatprep.subr.bf16.mxu0 %v5930_v60  ;;  %v5990_v59 = vld [vmem:[%s8373_s1 + $0x38c] ss:$48 sps:$4 sm:$0xff]  }
  0xf1   :  { %2272 = vmatprep.subr.bf16.mxu1 %v5933_v61  ;;  %v5993_v60 = vld [vmem:[%s8373_s1 + $0x68c] ss:$48 sps:$4 sm:$0xff]  }
  0xf3   :  { %2203 = vmatpush2.bf16.msra.mxu0 %v5928_v62  ;;  %v5988_v62 = vld [vmem:[%s8373_s1 + $0x388] ss:$48 sps:$4 sm:$0xff]  }
  0xf4   :  { %2273 = vmatpush1.bf16.msra.mxu1 %v5931_v63  ;;  %2204 = vmatprep.subr.bf16.mxu0 %v5936_v0  ;;  %v5991_v63 = vld [vmem:[%s8373_s1 + $0x688] ss:$48 sps:$4 sm:$0xff]  }
  0xf5   :  { %2274 = vmatprep.subr.bf16.mxu1 %v5939_v1  ;;  %v1917_v1 = vpop.f32.mrf.mxu1 }
  0xf7   :  { %2205 = vmatpush2.bf16.msra.mxu0 %v5934_v3  ;;  %v5996_v3 = vld [vmem:[%s8373_s1 + $0x32c] ss:$48 sps:$4 sm:$0xff]  }
  0xf8   :  { %2275 = vmatpush1.bf16.msra.mxu1 %v5937_v4  ;;  %2206 = vmatprep.subr.bf16.mxu0 %v5942_v5  ;;  %v5999_v4 = vld [vmem:[%s8373_s1 + $0x62c] ss:$48 sps:$4 sm:$0xff]  }
  0xf9   :  { %2276 = vmatprep.subr.bf16.mxu1 %v5945_v8  ;;  %v5997_v8 = vld [vmem:[%s8373_s1 + $0x628] ss:$48 sps:$4 sm:$0xff]  }
  0xfb   :  { %2207 = vmatpush2.bf16.msra.mxu0 %v5940_v9 }
  0xfc   :  { %2277 = vmatpush1.bf16.msra.mxu1 %v5943_v10  ;;  %2208 = vmatprep.subr.bf16.mxu0 %v5948_v11  ;;  %v6002_v10 = vld [vmem:[%s8375_s3 + $0xac] ss:$12 sps:$4 sm:$0xff]  }
  0xfd   :  { %2278 = vmatprep.subr.bf16.mxu1 %v5951_v13  ;;  %v6005_v11 = vld [vmem:[%s8375_s3 + $0x22c] ss:$12 sps:$4 sm:$0xff]  }
  0xff   :  { %2209 = vmatpush2.bf16.msra.mxu0 %v5946_v14  ;;  %v6000_v14 = vld [vmem:[%s8375_s3 + $0xa8] ss:$12 sps:$4 sm:$0xff]  }
 0x100   :  { %2279 = vmatpush1.bf16.msra.mxu1 %v5949_v15  ;;  %2307 = vmatprep.subr.bf16.mxu0 %v5957_v6  ;;  %v332_v15 = vsub.s32 3, %v7248_v12  ;;  %v6008_v6 = vld [vmem:[%s8375_s3 + $0x94] ss:$12 sps:$4 sm:$0xff]  }
 0x101   :  { %2280 = vmatprep.subr.bf16.mxu1 %v5954_v18  ;;  %v6003_v18 = vld [vmem:[%s8375_s3 + $0x228] ss:$12 sps:$4 sm:$0xff]  }
 0x102   :  { %v1868_v24 = vpop.f32.mrf.mxu0  ;;  %2211 = vmatmul.mubr.bf16.vlgmr.msra.gmra.mxu0 %v7290_v25 }
 0x103   :  { %v1869_v28 = vadd.f32 %v1868_v24, %v321_v51  ;;  %2308 = vmatpush1.bf16.msra.mxu0 %v5955_v20  ;;  %2339 = vmatprep.mubr.bf16.mxu0 %v6410_v2 }
 0x104   :  { %2281 = vmatpush2.bf16.msra.mxu1 %v5952_v19  ;;  %v1870_v31 = vpop.f32.mrf.mxu0  ;;  %2309 = vmatprep.subr.bf16.mxu0 %v5963_v23 }
 0x105   :  { %2282 = vmatprep.subr.bf16.mxu1 %v5960_v21  ;;  %v1912_v33 = vadd.f32 %v1911_v22, %v1869_v28  ;;  %v1871_v0 = vadd.f32 %v1870_v31, %v325_v58  ;;  %v6006_v21 = vld [vmem:[%s8375_s3 + $0x90] ss:$12 sps:$4 sm:$0xff]   ;;  %v6011_v22 = vld [vmem:[%s8375_s3 + $0x214] ss:$12 sps:$4 sm:$0xff]  }
 0x106   :  { %v1872_v36 = vpop.f32.mrf.mxu0 }
 0x107   :  { %v1873_v40 = vadd.f32 %v1872_v36, %v321_v51  ;;  %2310 = vmatpush1.bf16.msra.mxu0 %v5961_v27  ;;  %v2350_v46 = vmax.f32 %v1912_v33, 0.0  ;;  %v1914_v9 = vadd.f32 %v7302_v30, %v1871_v0  ;;  %v333_v51 = vrot.slane %v7262_v16, %v332_v15  ;;  %v6014_v27 = vld [vmem:[%s8375_s3 + $0x7c] ss:$12 sps:$4 sm:$0xff]   ;;  %v6015_v33 = vld [vmem:[%s8375_s3 + $0x1f8] ss:$12 sps:$4 sm:$0xff]  }
 0x108   :  { %2283 = vmatpush2.bf16.msra.mxu1 %v5958_v26  ;;  %2311 = vmatprep.subr.bf16.mxu0 %v5969_v32  ;;  %v1874_v56 = vpop.f32.mrf.mxu0  ;;  %v6009_v26 = vld [vmem:[%s8375_s3 + $0x210] ss:$12 sps:$4 sm:$0xff]   ;;  %v6045_v0 = vld [vmem:[%s8375_s3 + $0x180] ss:$12 sps:$4 sm:$0xff]  }
 0x109   :  { %2284 = vmatprep.subr.bf16.mxu1 %v5966_v29  ;;  %v1916_v2 = vadd.f32 %v1915_v41, %v1873_v40  ;;  %v1875_v61 = vadd.f32 %v1874_v56, %v325_v58  ;;  %v2351_v19 = vmax.f32 %v1914_v9, 0.0  ;;  %v6018_v40 = vld [vmem:[%s8375_s3 + $0x60] ss:$12 sps:$4 sm:$0xff]   ;;  %v6033_v56 = vld [vmem:[%s8375_s3 + $0x1b0] ss:$12 sps:$4 sm:$0xff]  }
 0x10a   :  { %v6041_v58 = vld [vmem:[%s8375_s3 + $0x19c] ss:$12 sps:$4 sm:$0xff]   ;;  %v6059_v9 = vld [vmem:[%s8375_s3 + $0x2d4] ss:$12 sps:$4 sm:$0xff]  }
 0x10b   :  { %v2362_v47 = vmax.f32 %v1916_v2, 0.0  ;;  %2312 = vmatpush1.bf16.msra.mxu0 %v5967_v37  ;;  %v1918_v5 = vadd.f32 %v1917_v1, %v1875_v61  ;;  %v6020_v37 = vld [vmem:[%s8375_s3 + $0x64] ss:$12 sps:$4 sm:$0xff]   ;;  %v6021_v2 = vld [vmem:[%s8375_s3 + $0x1e0] ss:$12 sps:$4 sm:$0xff]  }
 0x10c   :  { %2285 = vmatpush2.bf16.msra.mxu1 %v5964_v34  ;;  %2313 = vmatprep.subr.bf16.mxu0 %v5975_v39  ;;  %v6044_v61 = vld [vmem:[%s8375_s3 + $0x4] ss:$12 sps:$4 sm:$0xff]   ;;  %v6050_v1 = vld [vmem:[%s8375_s3 + $0x16c] ss:$12 sps:$4 sm:$0xff]  }
 0x10d   :  { %2286 = vmatprep.subr.bf16.mxu1 %v5972_v38  ;;  %v7332_v48 = vpack.c.bf16 %v2362_v47, %v2350_v46  ;;  %v2363_v13 = vmax.f32 %v1918_v5, 0.0  ;;  %v6023_v38 = vld [vmem:[%s8375_s3 + $0x1e4] ss:$12 sps:$4 sm:$0xff]   ;;  %v6051_v5 = vld [vmem:[%s8375_s3 + $0x2e8] ss:$12 sps:$4 sm:$0xff]  }
 0x10f   :  { %2314 = vmatpush1.bf16.msra.mxu0 %v5973_v43  ;;  %v7398_v20 = vpack.c.bf16 %v2363_v13, %v2351_v19  ;;  %v6026_v43 = vld [vmem:[%s8375_s3 + $0x4c] ss:$12 sps:$4 sm:$0xff]  }
 0x110   :  { %2287 = vmatpush2.bf16.msra.mxu1 %v5970_v42  ;;  %2315 = vmatprep.subr.bf16.mxu0 %v5981_v45  ;;  %v6060_v13 = vld [vmem:[%s8375_s3 + $0x138] ss:$12 sps:$4 sm:$0xff]   ;;  %v6066_v19 = vld [vmem:[%s8375_s3 + $0x120] ss:$12 sps:$4 sm:$0xff]  }
 0x111   :  { %2288 = vmatprep.subr.bf16.mxu1 %v5978_v44  ;;  %v6029_v44 = vld [vmem:[%s8375_s3 + $0x1cc] ss:$12 sps:$4 sm:$0xff]  }
 0x113   :  { %2316 = vmatpush1.bf16.msra.mxu0 %v5979_v50  ;;  %v6027_v50 = vld [vmem:[%s8375_s3 + $0x1c8] ss:$12 sps:$4 sm:$0xff]  }
 0x114   :  { %2289 = vmatpush2.bf16.msra.mxu1 %v5976_v49  ;;  %2317 = vmatprep.subr.bf16.mxu0 %v5987_v53  ;;  %v6024_v49 = vld [vmem:[%s8375_s3 + $0x48] ss:$12 sps:$4 sm:$0xff]  }
 0x115   :  { %2290 = vmatprep.subr.bf16.mxu1 %v5984_v52  ;;  %v6032_v52 = vld [vmem:[%s8375_s3 + $0x34] ss:$12 sps:$4 sm:$0xff]  }
 0x116   :  { %v6035_v53 = vld [vmem:[%s8375_s3 + $0x1b4] ss:$12 sps:$4 sm:$0xff]  }
 0x117   :  { %2318 = vmatpush1.bf16.msra.mxu0 %v5985_v57  ;;  %v6038_v57 = vld [vmem:[%s8375_s3 + $0x1c] ss:$12 sps:$4 sm:$0xff]  }
 0x118   :  { %2291 = vmatpush2.bf16.msra.mxu1 %v5982_v55  ;;  %2319 = vmatprep.subr.bf16.mxu0 %v5993_v60  ;;  %v6030_v55 = vld [vmem:[%s8375_s3 + $0x30] ss:$12 sps:$4 sm:$0xff]   ;;  %v6039_v60 = vld [vmem:[%s8375_s3 + $0x198] ss:$12 sps:$4 sm:$0xff]  }
 0x119   :  { %2292 = vmatprep.subr.bf16.mxu1 %v5990_v59  ;;  %v6036_v59 = vld [vmem:[%s8375_s3 + $0x18] ss:$12 sps:$4 sm:$0xff]  }
 0x11b   :  { %2320 = vmatpush1.bf16.msra.mxu0 %v5991_v63  ;;  %v6042_v63 = vld [vmem:[%s8375_s3] ss:$12 sps:$4 sm:$0xff]  }
 0x11c   :  { %2293 = vmatpush2.bf16.msra.mxu1 %v5988_v62  ;;  %2321 = vmatprep.subr.bf16.mxu0 %v5999_v4  ;;  %v6047_v62 = vld [vmem:[%s8375_s3 + $0x184] ss:$12 sps:$4 sm:$0xff]   ;;  %v6048_v4 = vld [vmem:[%s8375_s3 + $0x168] ss:$12 sps:$4 sm:$0xff]  }
 0x11d   :  { %2294 = vmatprep.subr.bf16.mxu1 %v5996_v3  ;;  %v6053_v3 = vld [vmem:[%s8375_s3 + $0x2ec] ss:$12 sps:$4 sm:$0xff]  }
 0x11f   :  { %2322 = vmatpush1.bf16.msra.mxu0 %v5997_v8  ;;  %v6054_v8 = vld [vmem:[%s8375_s3 + $0x150] ss:$12 sps:$4 sm:$0xff]  }
 0x120   :  { %2295 = vmatpush2.bf16.msra.mxu1 %v5994_v7  ;;  %4323 = vmatprep.subr.bf16.mxu0 %v6002_v10  ;;  %v6056_v7 = vld [vmem:[%s8375_s3 + $0x154] ss:$12 sps:$4 sm:$0xff]   ;;  %v6057_v10 = vld [vmem:[%s8375_s3 + $0x2d0] ss:$12 sps:$4 sm:$0xff]  }
 0x121   :  { %4366 = vmatprep.subr.bf16.mxu1 %v6005_v11  ;;  %v6062_v11 = vld [vmem:[%s8375_s3 + $0x13c] ss:$12 sps:$4 sm:$0xff]  }
 0x122   :  { %v7411_v24 = vpop.f32.mrf.mxu0  ;;  %2340 = vmatmul.mubr.bf16.vlgmr.msra.gmra.mxu0 %v7071_v17  ;;  %v6012_v17 = vld [vmem:[%s8375_s3 + $0x78] ss:$12 sps:$4 sm:$0xff]  }
 0x123   :  { %v7409_v23 = vpop.f32.mrf.mxu1  ;;  %2297 = vmatmul.mubr.bf16.vlgmr.msra.gmra.mxu1 %v7290_v25  ;;  %4324 = vmatpush1.bf16.msra.mxu0 %v6000_v14  ;;  %v6017_v25 = vld [vmem:[%s8375_s3 + $0x1fc] ss:$12 sps:$4 sm:$0xff]  }
 0x124   :  { %4355 = vmatprep.mubr.bf16.mxu0 %v7398_v20  ;;  %4367 = vmatpush1.bf16.msra.mxu1 %v6003_v18  ;;  %v1999_v29 = vpop.f32.mrf.mxu0  ;;  %v6065_v14 = vld [vmem:[%s8375_s3 + $0x2bc] ss:$12 sps:$4 sm:$0xff]   ;;  %v6063_v18 = vld [vmem:[%s8375_s3 + $0x2b8] ss:$12 sps:$4 sm:$0xff]  }
 0x125   :  { %v1956_v28 = vpop.f32.mrf.mxu1  ;;  %4325 = vmatprep.subr.bf16.mxu0 %v6008_v6  ;;  %4368 = vmatprep.subr.bf16.mxu1 %v6011_v22  ;;  %v6068_v6 = vld [vmem:[%s8375_s3 + $0x124] ss:$12 sps:$4 sm:$0xff]   ;;  %v6074_v22 = vld [vmem:[%s8375_s3 + $0x10c] ss:$12 sps:$4 sm:$0xff]  }
 0x126   :  { %v1957_v30 = vadd.f32 %v1956_v28, %v333_v51  ;;  %v7430_v32 = vpop.f32.mrf.mxu0  ;;  %v6077_v28 = vld [vmem:[%s8375_s3 + $0x28c] ss:$12 sps:$4 sm:$0xff]  }
 0x127   :  { %v7428_v31 = vpop.f32.mrf.mxu1  ;;  %4326 = vmatpush1.bf16.msra.mxu0 %v6006_v21  ;;  %v6069_v21 = vld [vmem:[%s8375_s3 + $0x2a0] ss:$12 sps:$4 sm:$0xff]  }
 0x128   :  { %v2000_v34 = vadd.f32 %v1999_v29, %v1957_v30  ;;  %4369 = vmatpush1.bf16.msra.mxu1 %v6009_v26  ;;  %4327 = vmatprep.subr.bf16.mxu0 %v6014_v27  ;;  %v2003_v41 = vpop.f32.mrf.mxu0  ;;  %v7550_v26 = vsub.s32 2, %v7248_v12  ;;  %v6072_v27 = vld [vmem:[%s8375_s3 + $0x108] ss:$12 sps:$4 sm:$0xff]  }
 0x129   :  { %v1960_v36 = vpop.f32.mrf.mxu1  ;;  %4370 = vmatprep.subr.bf16.mxu1 %v6017_v25  ;;  %v6075_v29 = vld [vmem:[%s8375_s3 + $0x288] ss:$12 sps:$4 sm:$0xff]  }
 0x12a   :  { %v1961_v39 = vadd.f32 %v1960_v36, %v333_v51  ;;  %v2353_v45 = vmax.f32 %v2000_v34, 0.0  ;;  %v6071_v51 = vld [vmem:[%s8375_s3 + $0x2a4] ss:$12 sps:$4 sm:$0xff]   ;;  %v6080_v30 = vld [vmem:[%s8375_s3 + $0xf4] ss:$12 sps:$4 sm:$0xff]   ;;  %v329_v25 = vrot.slane %v7262_v16, %v7550_v26 }
 0x12b   :  { %4328 = vmatpush1.bf16.msra.mxu0 %v6012_v17  ;;  %v6083_v17 = vld [vmem:[%s8375_s3 + $0x274] ss:$12 sps:$4 sm:$0xff]   ;;  %v6081_v34 = vld [vmem:[%s8375_s3 + $0x270] ss:$12 sps:$4 sm:$0xff]  }
 0x12c   :  { %v2004_v42 = vadd.f32 %v2003_v41, %v1961_v39  ;;  %4371 = vmatpush1.bf16.msra.mxu1 %v6015_v33  ;;  %4329 = vmatprep.subr.bf16.mxu0 %v6020_v37  ;;  %v6078_v33 = vld [vmem:[%s8375_s3 + $0xf0] ss:$12 sps:$4 sm:$0xff]   ;;  %v1959_v37 = vadd.f32 %v7428_v31, %v329_v25  ;;  %v1955_v39 = vadd.f32 %v7409_v23, %v329_v25  ;;  %v6087_v41 = vld [vmem:[%s8375_s3 + $0x258] ss:$12 sps:$4 sm:$0xff]   ;;  %v6131_v25 = vld [vmem:[%s8375_s3 + $0x4b4] ss:$12 sps:$4 sm:$0xff]  }
 0x12d   :  { %4372 = vmatprep.subr.bf16.mxu1 %v6023_v38  ;;  %v6086_v36 = vld [vmem:[%s8375_s3 + $0xdc] ss:$12 sps:$4 sm:$0xff]   ;;  %v6092_v31 = vld [vmem:[%s8375_s3 + $0xc4] ss:$12 sps:$4 sm:$0xff]  }
 0x12e   :  { %v2365_v46 = vmax.f32 %v2004_v42, 0.0  ;;  %v6089_v38 = vld [vmem:[%s8375_s3 + $0x25c] ss:$12 sps:$4 sm:$0xff]   ;;  %v6095_v23 = vld [vmem:[%s8375_s3 + $0x244] ss:$12 sps:$4 sm:$0xff]  }
 0x12f   :  { %4330 = vmatpush1.bf16.msra.mxu0 %v6018_v40  ;;  %v6084_v40 = vld [vmem:[%s8375_s3 + $0xd8] ss:$12 sps:$4 sm:$0xff]   ;;  %v6090_v42 = vld [vmem:[%s8375_s3 + $0xc0] ss:$12 sps:$4 sm:$0xff]  }
 0x130   :  { %v7453_v47 = vpack.c.bf16 %v2365_v46, %v2353_v45  ;;  %4373 = vmatpush1.bf16.msra.mxu1 %v6021_v2  ;;  %4331 = vmatprep.subr.bf16.mxu0 %v6026_v43  ;;  %v2002_v2 = vadd.f32 %v7430_v32, %v1959_v37  ;;  %v1998_v43 = vadd.f32 %v7411_v24, %v1955_v39  ;;  %v6098_v32 = vld [vmem:[%s8375_s3 + $0x3ac] ss:$12 sps:$4 sm:$0xff]   ;;  %v6096_v24 = vld [vmem:[%s8375_s3 + $0x3a8] ss:$12 sps:$4 sm:$0xff]  }
 0x131   :  { %4374 = vmatprep.subr.bf16.mxu1 %v6029_v44  ;;  %v6093_v44 = vld [vmem:[%s8375_s3 + $0x240] ss:$12 sps:$4 sm:$0xff]   ;;  %v6137_v37 = vld [vmem:[%s8375_s3 + $0x49c] ss:$12 sps:$4 sm:$0xff]   ;;  %v6135_v39 = vld [vmem:[%s8375_s3 + $0x498] ss:$12 sps:$4 sm:$0xff]  }
 0x132   :  { %4398 = vmatprep.mubr.bf16.mxu1 %v7453_v47  ;;  %v6101_v45 = vld [vmem:[%s8375_s3 + $0x52c] ss:$12 sps:$4 sm:$0xff]   ;;  %v2364_v46 = vmax.f32 %v2002_v2, 0.0 }
 0x133   :  { %4332 = vmatpush1.bf16.msra.mxu0 %v6024_v49  ;;  %v340_v49 = vsub.s32 5, %v7248_v12  ;;  %v6141_v2 = vld [vmem:[%s8375_s3 + $0x480] ss:$12 sps:$4 sm:$0xff]  }
 0x134   :  { %4375 = vmatpush1.bf16.msra.mxu1 %v6027_v50  ;;  %4333 = vmatprep.subr.bf16.mxu0 %v6032_v52  ;;  %v6099_v52 = vld [vmem:[%s8375_s3 + $0x528] ss:$12 sps:$4 sm:$0xff]  }
 0x135   :  { %4376 = vmatprep.subr.bf16.mxu1 %v6035_v53  ;;  %v2352_v53 = vmax.f32 %v1998_v43, 0.0  ;;  %v348_v43 = vsub.s32 7, %v7248_v12 }
 0x137   :  { %4334 = vmatpush1.bf16.msra.mxu0 %v6030_v55  ;;  %v6104_v55 = vld [vmem:[%s8375_s3 + $0x394] ss:$12 sps:$4 sm:$0xff]  }
 0x138   :  { %4377 = vmatpush1.bf16.msra.mxu1 %v6033_v56  ;;  %4335 = vmatprep.subr.bf16.mxu0 %v6038_v57  ;;  %v7621_v56 = vpack.c.bf16 %v2364_v46, %v2352_v53  ;;  %v341_v57 = vrot.slane %v7262_v16, %v340_v49  ;;  %v6387_v46 = vld [vmem:[%s8374_s2] sm:$0xff] }
 0x139   :  { %4378 = vmatprep.subr.bf16.mxu1 %v6041_v58  ;;  %v6102_v58 = vld [vmem:[%s8375_s3 + $0x390] ss:$12 sps:$4 sm:$0xff]   ;;  %v349_v49 = vrot.slane %v6387_v46, %v348_v43 }
 0x13b   :  { %4336 = vmatpush1.bf16.msra.mxu0 %v6036_v59  ;;  %v6107_v59 = vld [vmem:[%s8375_s3 + $0x514] ss:$12 sps:$4 sm:$0xff]  }
 0x13c   :  { %4379 = vmatpush1.bf16.msra.mxu1 %v6039_v60  ;;  %4337 = vmatprep.subr.bf16.mxu0 %v6044_v61 }
 0x13d   :  { %4380 = vmatprep.subr.bf16.mxu1 %v6047_v62  ;;  %v6105_v62 = vld [vmem:[%s8375_s3 + $0x510] ss:$12 sps:$4 sm:$0xff]  }
 0x13f   :  { %4338 = vmatpush1.bf16.msra.mxu0 %v6042_v63  ;;  %v6110_v63 = vld [vmem:[%s8375_s3 + $0x37c] ss:$12 sps:$4 sm:$0xff]  }
 0x140   :  { %4381 = vmatpush1.bf16.msra.mxu1 %v6045_v0  ;;  %4339 = vmatprep.subr.bf16.mxu0 %v6050_v1  ;;  %v6113_v1 = vld [vmem:[%s8375_s3 + $0x4fc] ss:$12 sps:$4 sm:$0xff]  }
 0x141   :  { %4382 = vmatprep.subr.bf16.mxu1 %v6053_v3 }
 0x143   :  { %4340 = vmatpush2.bf16.msra.mxu0 %v6048_v4  ;;  %v7613_v50 = vpop.f32.mrf.mxu1 }
 0x144   :  { %4383 = vmatpush2.bf16.msra.mxu1 %v6051_v5  ;;  %4341 = vmatprep.subr.bf16.mxu0 %v6056_v7  ;;  %v6108_v5 = vld [vmem:[%s8375_s3 + $0x378] ss:$12 sps:$4 sm:$0xff]  }
 0x145   :  { %4384 = vmatprep.subr.bf16.mxu1 %v6059_v9  ;;  %v2085_v60 = vpop.f32.mrf.mxu1  ;;  %v6111_v7 = vld [vmem:[%s8375_s3 + $0x4f8] ss:$12 sps:$4 sm:$0xff]  }
 0x146   :  { %v6116_v9 = vld [vmem:[%s8375_s3 + $0x364] ss:$12 sps:$4 sm:$0xff]  }
 0x147   :  { %4342 = vmatpush2.bf16.msra.mxu0 %v6054_v8  ;;  %v7643_v3 = vpop.f32.mrf.mxu1 }
 0x148   :  { %4385 = vmatpush2.bf16.msra.mxu1 %v6057_v10  ;;  %4343 = vmatprep.subr.bf16.mxu0 %v6062_v11 }
 0x149   :  { %4386 = vmatprep.subr.bf16.mxu1 %v6065_v14  ;;  %v2089_v14 = vpop.f32.mrf.mxu1 }
 0x14b   :  { %4344 = vmatpush2.bf16.msra.mxu0 %v6060_v13  ;;  %v6119_v13 = vld [vmem:[%s8375_s3 + $0x4e4] ss:$12 sps:$4 sm:$0xff]  }
 0x14c   :  { %4387 = vmatpush2.bf16.msra.mxu1 %v6063_v18  ;;  %4345 = vmatprep.subr.bf16.mxu0 %v6068_v6  ;;  %v6114_v18 = vld [vmem:[%s8375_s3 + $0x360] ss:$12 sps:$4 sm:$0xff]  }
 0x14d   :  { %4388 = vmatprep.subr.bf16.mxu1 %v6071_v51  ;;  %v6122_v51 = vld [vmem:[%s8375_s3 + $0x34c] ss:$12 sps:$4 sm:$0xff]  }
 0x14f   :  { %4346 = vmatpush2.bf16.msra.mxu0 %v6066_v19  ;;  %v6117_v19 = vld [vmem:[%s8375_s3 + $0x4e0] ss:$12 sps:$4 sm:$0xff]  }
 0x150   :  { %4389 = vmatpush2.bf16.msra.mxu1 %v6069_v21  ;;  %4347 = vmatprep.subr.bf16.mxu0 %v6074_v22 }
 0x151   :  { %4390 = vmatprep.subr.bf16.mxu1 %v6077_v28  ;;  %v6125_v28 = vld [vmem:[%s8375_s3 + $0x4cc] ss:$12 sps:$4 sm:$0xff]  }
 0x153   :  { %4348 = vmatpush2.bf16.msra.mxu0 %v6072_v27  ;;  %v6120_v27 = vld [vmem:[%s8375_s3 + $0x348] ss:$12 sps:$4 sm:$0xff]  }
 0x154   :  { %4391 = vmatpush2.bf16.msra.mxu1 %v6075_v29  ;;  %4349 = vmatprep.subr.bf16.mxu0 %v6080_v30  ;;  %v6123_v29 = vld [vmem:[%s8375_s3 + $0x4c8] ss:$12 sps:$4 sm:$0xff]  }
 0x155   :  { %4392 = vmatprep.subr.bf16.mxu1 %v6083_v17  ;;  %v6128_v17 = vld [vmem:[%s8375_s3 + $0x334] ss:$12 sps:$4 sm:$0xff]  }
 0x157   :  { %4350 = vmatpush2.bf16.msra.mxu0 %v6078_v33  ;;  %v6126_v33 = vld [vmem:[%s8375_s3 + $0x330] ss:$12 sps:$4 sm:$0xff]  }
 0x158   :  { %4393 = vmatpush2.bf16.msra.mxu1 %v6081_v34  ;;  %4351 = vmatprep.subr.bf16.mxu0 %v6086_v36  ;;  %v6129_v34 = vld [vmem:[%s8375_s3 + $0x4b0] ss:$12 sps:$4 sm:$0xff]  }
 0x159   :  { %4394 = vmatprep.subr.bf16.mxu1 %v6089_v38  ;;  %v6134_v36 = vld [vmem:[%s8375_s3 + $0x31c] ss:$12 sps:$4 sm:$0xff]   ;;  %v6132_v38 = vld [vmem:[%s8375_s3 + $0x318] ss:$12 sps:$4 sm:$0xff]  }
 0x15b   :  { %4352 = vmatpush2.bf16.msra.mxu0 %v6084_v40  ;;  %v6140_v40 = vld [vmem:[%s8375_s3 + $0x304] ss:$12 sps:$4 sm:$0xff]  }
 0x15c   :  { %4395 = vmatpush2.bf16.msra.mxu1 %v6087_v41  ;;  %4353 = vmatprep.subr.bf16.mxu0 %v6092_v31  ;;  %v6143_v41 = vld [vmem:[%s8375_s3 + $0x484] ss:$12 sps:$4 sm:$0xff]   ;;  %v6138_v31 = vld [vmem:[%s8375_s3 + $0x300] ss:$12 sps:$4 sm:$0xff]  }
 0x15d   :  { %4396 = vmatprep.subr.bf16.mxu1 %v6095_v23  ;;  %v6146_v23 = vld [vmem:[%s8375_s3 + $0x46c] ss:$12 sps:$4 sm:$0xff]  }
 0x15f   :  { %4354 = vmatpush2.bf16.msra.mxu0 %v6090_v42  ;;  %v6149_v42 = vld [vmem:[%s8375_s3 + $0x5ec] ss:$12 sps:$4 sm:$0xff]  }
 0x160   :  { %4397 = vmatpush2.bf16.msra.mxu1 %v6093_v44  ;;  %4409 = vmatprep.subr.bf16.mxu0 %v6098_v32  ;;  %v6144_v44 = vld [vmem:[%s8375_s3 + $0x468] ss:$12 sps:$4 sm:$0xff]  }
 0x161   :  { %4452 = vmatprep.subr.bf16.mxu1 %v6101_v45  ;;  %v6147_v32 = vld [vmem:[%s8375_s3 + $0x5e8] ss:$12 sps:$4 sm:$0xff]  }
 0x162   :  { %v7630_v61 = vpop.f32.mrf.mxu0  ;;  %4356 = vmatmul.mubr.bf16.vlgmr.msra.gmra.mxu0 %v7332_v48  ;;  %v6152_v45 = vld [vmem:[%s8375_s3 + $0x454] ss:$12 sps:$4 sm:$0xff]  }
 0x163   :  { %4399 = vmatmul.mubr.bf16.vlgmr.msra.gmra.mxu1 %v7621_v56  ;;  %4410 = vmatpush1.bf16.msra.mxu0 %v6096_v24  ;;  %v6155_v24 = vld [vmem:[%s8375_s3 + $0x5d4] ss:$12 sps:$4 sm:$0xff]  }
 0x164   :  { %4453 = vmatpush1.bf16.msra.mxu1 %v6099_v52  ;;  %v2042_v16 = vpop.f32.mrf.mxu0  ;;  %4411 = vmatprep.subr.bf16.mxu0 %v6104_v55  ;;  %v6150_v55 = vld [vmem:[%s8375_s3 + $0x450] ss:$12 sps:$4 sm:$0xff]  }
 0x165   :  { %v2043_v0 = vadd.f32 %v2042_v16, %v341_v57  ;;  %4454 = vmatprep.subr.bf16.mxu1 %v6107_v59  ;;  %v6153_v59 = vld [vmem:[%s8375_s3 + $0x5d0] ss:$12 sps:$4 sm:$0xff]  }
 0x166   :  { %v7645_v4 = vpop.f32.mrf.mxu0  ;;  %v6161_v16 = vld [vmem:[%s8375_s3 + $0x5bc] ss:$12 sps:$4 sm:$0xff]  }
 0x167   :  { %4412 = vmatpush1.bf16.msra.mxu0 %v6102_v58  ;;  %v2086_v10 = vadd.f32 %v2085_v60, %v2043_v0  ;;  %v6158_v60 = vld [vmem:[%s8375_s3 + $0x43c] ss:$12 sps:$4 sm:$0xff]  }
 0x168   :  { %4455 = vmatpush1.bf16.msra.mxu1 %v6105_v62  ;;  %v2046_v8 = vpop.f32.mrf.mxu0  ;;  %4413 = vmatprep.subr.bf16.mxu0 %v6110_v63 }
 0x169   :  { %v2047_v11 = vadd.f32 %v2046_v8, %v341_v57  ;;  %4456 = vmatprep.subr.bf16.mxu1 %v6113_v1  ;;  %v2355_v21 = vmax.f32 %v2086_v10, 0.0  ;;  %v6156_v1 = vld [vmem:[%s8375_s3 + $0x438] ss:$12 sps:$4 sm:$0xff]  }
 0x16a   :  { %v6164_v8 = vld [vmem:[%s8375_s3 + $0x424] ss:$12 sps:$4 sm:$0xff]  }
 0x16b   :  { %v2090_v6 = vadd.f32 %v2089_v14, %v2047_v11  ;;  %4414 = vmatpush1.bf16.msra.mxu0 %v6108_v5  ;;  %v6159_v5 = vld [vmem:[%s8375_s3 + $0x5b8] ss:$12 sps:$4 sm:$0xff]   ;;  %v344_v14 = vsub.s32 6, %v7248_v12 }
 0x16c   :  { %4457 = vmatpush1.bf16.msra.mxu1 %v6111_v7  ;;  %4415 = vmatprep.subr.bf16.mxu0 %v6116_v9  ;;  %v6167_v11 = vld [vmem:[%s8375_s3 + $0x5a4] ss:$12 sps:$4 sm:$0xff]  }
 0x16d   :  { %v2367_v22 = vmax.f32 %v2090_v6, 0.0  ;;  %4458 = vmatprep.subr.bf16.mxu1 %v6119_v13  ;;  %v336_v13 = vsub.s32 4, %v7248_v12 }
 0x16f   :  { %4416 = vmatpush1.bf16.msra.mxu0 %v6114_v18  ;;  %v7677_v30 = vpack.c.bf16 %v2367_v22, %v2355_v21  ;;  %v6170_v21 = vld [vmem:[%s8375_s3 + $0x40c] ss:$12 sps:$4 sm:$0xff]  }
 0x170   :  { %4459 = vmatpush1.bf16.msra.mxu1 %v6117_v19  ;;  %4417 = vmatprep.subr.bf16.mxu0 %v6122_v51  ;;  %v6162_v19 = vld [vmem:[%s8375_s3 + $0x420] ss:$12 sps:$4 sm:$0xff]  }
 0x171   :  { %4441 = vmatprep.mubr.bf16.mxu0 %v7677_v30  ;;  %4460 = vmatprep.subr.bf16.mxu1 %v6125_v28  ;;  %v6165_v51 = vld [vmem:[%s8375_s3 + $0x5a0] ss:$12 sps:$4 sm:$0xff]   ;;  %v6168_v28 = vld [vmem:[%s8375_s3 + $0x408] ss:$12 sps:$4 sm:$0xff]  }
 0x173   :  { %4418 = vmatpush1.bf16.msra.mxu0 %v6120_v27 }
 0x174   :  { %4461 = vmatpush1.bf16.msra.mxu1 %v6123_v29  ;;  %4419 = vmatprep.subr.bf16.mxu0 %v6128_v17  ;;  %v6173_v29 = vld [vmem:[%s8375_s3 + $0x58c] ss:$12 sps:$4 sm:$0xff]   ;;  %v6171_v17 = vld [vmem:[%s8375_s3 + $0x588] ss:$12 sps:$4 sm:$0xff]  }
 0x175   :  { %4462 = vmatprep.subr.bf16.mxu1 %v6131_v25 }
 0x177   :  { %4420 = vmatpush1.bf16.msra.mxu0 %v6126_v33  ;;  %v6176_v33 = vld [vmem:[%s8375_s3 + $0x3f4] ss:$12 sps:$4 sm:$0xff]  }
 0x178   :  { %4463 = vmatpush1.bf16.msra.mxu1 %v6129_v34  ;;  %4421 = vmatprep.subr.bf16.mxu0 %v6134_v36  ;;  %v6179_v34 = vld [vmem:[%s8375_s3 + $0x574] ss:$12 sps:$4 sm:$0xff]   ;;  %v337_v36 = vrot.slane %v6387_v46, %v336_v13 }
 0x179   :  { %4464 = vmatprep.subr.bf16.mxu1 %v6137_v37  ;;  %v345_v37 = vrot.slane %v6387_v46, %v344_v14 }
 0x17b   :  { %4422 = vmatpush1.bf16.msra.mxu0 %v6132_v38  ;;  %v6174_v38 = vld [vmem:[%s8375_s3 + $0x3f0] ss:$12 sps:$4 sm:$0xff]  }
 0x17c   :  { %4465 = vmatpush1.bf16.msra.mxu1 %v6135_v39  ;;  %4423 = vmatprep.subr.bf16.mxu0 %v6140_v40 }
 0x17d   :  { %4466 = vmatprep.subr.bf16.mxu1 %v6143_v41 }
 0x17f   :  { %4424 = vmatpush1.bf16.msra.mxu0 %v6138_v31 }
 0x180   :  { %4467 = vmatpush1.bf16.msra.mxu1 %v6141_v2  ;;  %4425 = vmatprep.subr.bf16.mxu0 %v6146_v23 }
 0x181   :  { %4468 = vmatprep.subr.bf16.mxu1 %v6149_v42 }
 0x182   :  { %v7740_v53 = vpop.f32.mrf.mxu0 }
 0x183   :  { %v7738_v52 = vpop.f32.mrf.mxu1  ;;  %4426 = vmatpush2.bf16.msra.mxu0 %v6144_v44 }
 0x184   :  { %4469 = vmatpush2.bf16.msra.mxu1 %v6147_v32  ;;  %v2171_v58 = vpop.f32.mrf.mxu0  ;;  %4427 = vmatprep.subr.bf16.mxu0 %v6152_v45 }
 0x185   :  { %v2128_v57 = vpop.f32.mrf.mxu1  ;;  %4470 = vmatprep.subr.bf16.mxu1 %v6155_v24 }
 0x186   :  { %v2129_v62 = vadd.f32 %v2128_v57, %v349_v49  ;;  %v2173_v0 = vpop.f32.mrf.mxu0 }
 0x187   :  { %v2130_v63 = vpop.f32.mrf.mxu1  ;;  %4428 = vmatpush2.bf16.msra.mxu0 %v6150_v55 }
 0x188   :  { %4471 = vmatpush2.bf16.msra.mxu1 %v6153_v59  ;;  %4429 = vmatprep.subr.bf16.mxu0 %v6158_v60  ;;  %v2172_v9 = vadd.f32 %v2171_v58, %v2129_v62  ;;  %v2175_v18 = vpop.f32.mrf.mxu0 }
 0x189   :  { %v2132_v7 = vpop.f32.mrf.mxu1  ;;  %4472 = vmatprep.subr.bf16.mxu1 %v6161_v16 }
 0x18a   :  { %v2133_v10 = vadd.f32 %v2132_v7, %v349_v49  ;;  %v2357_v22 = vmax.f32 %v2172_v9, 0.0 }
 0x18b   :  { %4430 = vmatpush2.bf16.msra.mxu0 %v6156_v1 }
 0x18c   :  { %v2176_v6 = vadd.f32 %v2175_v18, %v2133_v10  ;;  %4473 = vmatpush2.bf16.msra.mxu1 %v6159_v5  ;;  %4431 = vmatprep.subr.bf16.mxu0 %v6164_v8 }
 0x18d   :  { %4474 = vmatprep.subr.bf16.mxu1 %v6167_v11 }
 0x18e   :  { %v2369_v27 = vmax.f32 %v2176_v6, 0.0 }
 0x18f   :  { %4432 = vmatpush2.bf16.msra.mxu0 %v6162_v19 }
 0x190   :  { %v7786_v25 = vpack.c.bf16 %v2369_v27, %v2357_v22  ;;  %4475 = vmatpush2.bf16.msra.mxu1 %v6165_v51  ;;  %4433 = vmatprep.subr.bf16.mxu0 %v6170_v21 }
 0x191   :  { %4476 = vmatprep.subr.bf16.mxu1 %v6173_v29 }
 0x192   :  { %4484 = vmatprep.mubr.bf16.mxu1 %v7786_v25 }
 0x193   :  { %4434 = vmatpush2.bf16.msra.mxu0 %v6168_v28 }
 0x194   :  { %10 = vsyncpa [#allocation3], 0  ;;  %v2045_v39 = vadd.f32 %v7645_v4, %v337_v36  ;;  %4477 = vmatpush2.bf16.msra.mxu1 %v6171_v17  ;;  %4435 = vmatprep.subr.bf16.mxu0 %v6176_v33  ;;  %v6177_v40 = vld [vmem:[%s8375_s3 + $0x570] ss:$12 sps:$4 sm:$0xff]   ;;  %v2131_v31 = vadd.f32 %v2130_v63, %v345_v37  ;;  %v2041_v23 = vadd.f32 %v7630_v61, %v337_v36  ;;  %v6180_v42 = vld [vmem:[%s8375_s3 + $0x3d8] ss:$12 sps:$4 sm:$0xff]  }
 0x195   :  { %v6182_v41 = vld [vmem:[%s8375_s3 + $0x3dc] ss:$12 sps:$4 sm:$0xff]   ;;  %4478 = vmatprep.subr.bf16.mxu1 %v6179_v34  ;;  %v2127_v4 = vadd.f32 %v7738_v52, %v345_v37  ;;  %v6183_v44 = vld [vmem:[%s8375_s3 + $0x558] ss:$12 sps:$4 sm:$0xff]   ;;  %v6186_v49 = vld [vmem:[%s8375_s3 + $0x3c0] ss:$12 sps:$4 sm:$0xff]  }
 0x196   :  { %v6185_v2 = vld [vmem:[%s8375_s3 + $0x55c] ss:$12 sps:$4 sm:$0xff]   ;;  %v2088_v43 = vadd.f32 %v7643_v3, %v2045_v39  ;;  %v6188_v32 = vld [vmem:[%s8375_s3 + $0x3c4] ss:$12 sps:$4 sm:$0xff]   ;;  %v2174_v61 = vadd.f32 %v2173_v0, %v2131_v31  ;;  %v2084_v46 = vadd.f32 %v7613_v50, %v2041_v23  ;;  %v6189_v52 = vld [vmem:[%s8375_s3 + $0x540] ss:$12 sps:$4 sm:$0xff]  }
 0x197   :  { %4436 = vmatpush2.bf16.msra.mxu0 %v6174_v38  ;;  %v6191_v45 = vld [vmem:[%s8375_s3 + $0x544] ss:$12 sps:$4 sm:$0xff]   ;;  %v2170_v3 = vadd.f32 %v7740_v53, %v2127_v4  ;;  %v6194_v55 = vld [vmem:[%s8375_s3 + $0x6ac] ss:$12 sps:$4 sm:$0xff]   ;;  %v6192_v59 = vld [vmem:[%s8375_s3 + $0x6a8] ss:$12 sps:$4 sm:$0xff]  }
 0x198   :  { %4479 = vmatpush2.bf16.msra.mxu1 %v6177_v40  ;;  %4437 = vmatprep.subr.bf16.mxu0 %v6182_v41  ;;  %v2366_v24 = vmax.f32 %v2088_v43, 0.0  ;;  %v2368_v57 = vmax.f32 %v2174_v61, 0.0  ;;  %v6206_v50 = vld [vmem:[%s8375_s3 + $0x82c] ss:$12 sps:$4 sm:$0xff]   ;;  %v2354_v53 = vmax.f32 %v2084_v46, 0.0 }
 0x199   :  { %4480 = vmatprep.subr.bf16.mxu1 %v6185_v2  ;;  %v2356_v58 = vmax.f32 %v2170_v3, 0.0  ;;  %v6197_v62 = vld [vmem:[%s8375_s3 + $0x694] ss:$12 sps:$4 sm:$0xff]   ;;  %v6195_v1 = vld [vmem:[%s8375_s3 + $0x690] ss:$12 sps:$4 sm:$0xff]  }
 0x19a   :  { %v7840_v60 = vpack.c.bf16 %v2366_v24, %v2354_v53  ;;  %v6204_v16 = vld [vmem:[%s8375_s3 + $0x828] ss:$12 sps:$4 sm:$0xff]   ;;  %v6210_v7 = vld [vmem:[%s8375_s3 + $0x810] ss:$12 sps:$4 sm:$0xff]   ;;  %v6198_v9 = vld [vmem:[%s8375_s3 + $0x678] ss:$12 sps:$4 sm:$0xff]  }
 0x19b   :  { %4438 = vmatpush2.bf16.msra.mxu0 %v6180_v42  ;;  %v7848_v63 = vpack.c.bf16 %v2368_v57, %v2356_v58  ;;  %v6212_v0 = vld [vmem:[%s8375_s3 + $0x814] ss:$12 sps:$4 sm:$0xff]   ;;  %v6200_v5 = vld [vmem:[%s8375_s3 + $0x67c] ss:$12 sps:$4 sm:$0xff]   ;;  %v6203_v10 = vld [vmem:[%s8375_s3 + $0x664] ss:$12 sps:$4 sm:$0xff]  }
 0x19c   :  { %4481 = vmatpush2.bf16.msra.mxu1 %v6183_v44  ;;  %4439 = vmatprep.subr.bf16.mxu0 %v6188_v32  ;;  %v6218_v8 = vld [vmem:[%s8375_s3 + $0x7fc] ss:$12 sps:$4 sm:$0xff]   ;;  %v6216_v11 = vld [vmem:[%s8375_s3 + $0x7f8] ss:$12 sps:$4 sm:$0xff]   ;;  %v6201_v14 = vld [vmem:[%s8375_s3 + $0x660] ss:$12 sps:$4 sm:$0xff]  }
 0x19d   :  { %4482 = vmatprep.subr.bf16.mxu1 %v6191_v45  ;;  %v6224_v13 = vld [vmem:[%s8375_s3 + $0x7e4] ss:$12 sps:$4 sm:$0xff]   ;;  %v6209_v18 = vld [vmem:[%s8375_s3 + $0x64c] ss:$12 sps:$4 sm:$0xff]   ;;  %v6207_v51 = vld [vmem:[%s8375_s3 + $0x648] ss:$12 sps:$4 sm:$0xff]  }
 0x19e   :  { %v6222_v6 = vld [vmem:[%s8375_s3 + $0x7e0] ss:$12 sps:$4 sm:$0xff]   ;;  %v6228_v22 = vld [vmem:[%s8375_s3 + $0x7c8] ss:$12 sps:$4 sm:$0xff]   ;;  %v6213_v28 = vld [vmem:[%s8375_s3 + $0x630] ss:$12 sps:$4 sm:$0xff]  }
 0x19f   :  { %4440 = vmatpush2.bf16.msra.mxu0 %v6186_v49  ;;  %v6230_v19 = vld [vmem:[%s8375_s3 + $0x7cc] ss:$12 sps:$4 sm:$0xff]   ;;  %v6215_v21 = vld [vmem:[%s8375_s3 + $0x634] ss:$12 sps:$4 sm:$0xff]   ;;  %v6221_v29 = vld [vmem:[%s8375_s3 + $0x61c] ss:$12 sps:$4 sm:$0xff]  }
 0x1a0   :  { %4483 = vmatpush2.bf16.msra.mxu1 %v6189_v52  ;;  %4495 = vmatprep.subr.bf16.mxu0 %v6194_v55  ;;  %v6236_v27 = vld [vmem:[%s8375_s3 + $0x7b4] ss:$12 sps:$4 sm:$0xff]   ;;  %v6234_v17 = vld [vmem:[%s8375_s3 + $0x7b0] ss:$12 sps:$4 sm:$0xff]   ;;  %v6219_v34 = vld [vmem:[%s8375_s3 + $0x618] ss:$12 sps:$4 sm:$0xff]  }
 0x1a1   :  { %4538 = vmatprep.subr.bf16.mxu1 %v6206_v50  ;;  %v6242_v33 = vld [vmem:[%s8375_s3 + $0x79c] ss:$12 sps:$4 sm:$0xff]   ;;  %v6227_v36 = vld [vmem:[%s8375_s3 + $0x604] ss:$12 sps:$4 sm:$0xff]   ;;  %v6225_v39 = vld [vmem:[%s8375_s3 + $0x600] ss:$12 sps:$4 sm:$0xff]  }
 0x1a2   :  { %4442 = vmatmul.mubr.bf16.vlgmr.msra.gmra.mxu0 %v7840_v60  ;;  %v6240_v37 = vld [vmem:[%s8375_s3 + $0x798] ss:$12 sps:$4 sm:$0xff]   ;;  %v6246_v41 = vld [vmem:[%s8375_s3 + $0x780] ss:$12 sps:$4 sm:$0xff]   ;;  %v6231_v23 = vld [vmem:[%s8375_s3 + $0x768] ss:$12 sps:$4 sm:$0xff]  }
 0x1a3   :  { %4485 = vmatmul.mubr.bf16.vlgmr.msra.gmra.mxu1 %v7848_v63  ;;  %4496 = vmatpush1.bf16.msra.mxu0 %v6192_v59  ;;  %v6248_v38 = vld [vmem:[%s8375_s3 + $0x784] ss:$12 sps:$4 sm:$0xff]   ;;  %v6233_v40 = vld [vmem:[%s8375_s3 + $0x76c] ss:$12 sps:$4 sm:$0xff]   ;;  %v7939_v2 = vpop.f32.mrf.mxu1  ;;  %v7947_v4 = vld [vmem:[%s8374_s2 + $0x8] sm:$0xf] }
 0x1a4   :  { %4497 = vmatprep.subr.bf16.mxu0 %v6197_v62  ;;  %4539 = vmatpush1.bf16.msra.mxu1 %v6204_v16  ;;  %v6254_v31 = vld [vmem:[%s8375_s3 + $0x8ec] ss:$12 sps:$4 sm:$0xff]   ;;  %v6239_v42 = vld [vmem:[%s8375_s3 + $0x754] ss:$12 sps:$4 sm:$0xff]   ;;  %v357_v44 = vrot.slane %v7947_v4, %v7347_v54  ;;  %v6237_v46 = vld [vmem:[%s8375_s3 + $0x750] ss:$12 sps:$4 sm:$0xff]  }
 0x1a5   :  { %4540 = vmatprep.subr.bf16.mxu1 %v6212_v0  ;;  %v6252_v43 = vld [vmem:[%s8375_s3 + $0x8e8] ss:$12 sps:$4 sm:$0xff]   ;;  %v2257_v61 = vpop.f32.mrf.mxu1  ;;  %v6258_v24 = vld [vmem:[%s8375_s3 + $0x8d0] ss:$12 sps:$4 sm:$0xff]   ;;  %v6243_v53 = vld [vmem:[%s8375_s3 + $0x738] ss:$12 sps:$4 sm:$0xff]  }
 0x1a6   :  { %v6260_v32 = vld [vmem:[%s8375_s3 + $0x8d4] ss:$12 sps:$4 sm:$0xff]   ;;  %v6245_v49 = vld [vmem:[%s8375_s3 + $0x73c] ss:$12 sps:$4 sm:$0xff]   ;;  %v6251_v59 = vld [vmem:[%s8375_s3 + $0x724] ss:$12 sps:$4 sm:$0xff]  }
 0x1a7   :  { %4498 = vmatpush1.bf16.msra.mxu0 %v6195_v1  ;;  %v6266_v55 = vld [vmem:[%s8375_s3 + $0x8bc] ss:$12 sps:$4 sm:$0xff]   ;;  %v2259_v57 = vpop.f32.mrf.mxu1  ;;  %v6264_v62 = vld [vmem:[%s8375_s3 + $0x8b8] ss:$12 sps:$4 sm:$0xff]   ;;  %v6289_v12 = vld [vmem:[%s8375_s3 + $0x140] ss:$12 sps:$4 sm:$0xff]  }
 0x1a8   :  { %4499 = vmatprep.subr.bf16.mxu0 %v6200_v5  ;;  %4541 = vmatpush1.bf16.msra.mxu1 %v6210_v7  ;;  %v6272_v1 = vld [vmem:[%s8375_s3 + $0x8a4] ss:$12 sps:$4 sm:$0xff]  }
 0x1a9   :  { %4542 = vmatprep.subr.bf16.mxu1 %v6218_v8  ;;  %v2261_v5 = vpop.f32.mrf.mxu1  ;;  %v6249_v8 = vld [vmem:[%s8375_s3 + $0x720] ss:$12 sps:$4 sm:$0xff]  }
 0x1ab   :  { %4500 = vmatpush1.bf16.msra.mxu0 %v6198_v9  ;;  %v6257_v9 = vld [vmem:[%s8375_s3 + $0x70c] ss:$12 sps:$4 sm:$0xff]  }
 0x1ac   :  { %4501 = vmatprep.subr.bf16.mxu0 %v6203_v10  ;;  %4543 = vmatpush1.bf16.msra.mxu1 %v6216_v11  ;;  %v6270_v10 = vld [vmem:[%s8375_s3 + $0x8a0] ss:$12 sps:$4 sm:$0xff]  }
 0x1ad   :  { %4544 = vmatprep.subr.bf16.mxu1 %v6224_v13 }
 0x1af   :  { %4502 = vmatpush1.bf16.msra.mxu0 %v6201_v14  ;;  %v6278_v14 = vld [vmem:[%s8375_s3 + $0x88c] ss:$12 sps:$4 sm:$0xff]  }
 0x1b0   :  { %4503 = vmatprep.subr.bf16.mxu0 %v6209_v18  ;;  %4545 = vmatpush1.bf16.msra.mxu1 %v6222_v6  ;;  %v6255_v6 = vld [vmem:[%s8375_s3 + $0x708] ss:$12 sps:$4 sm:$0xff]  }
 0x1b1   :  { %4546 = vmatprep.subr.bf16.mxu1 %v6230_v19  ;;  %v6263_v19 = vld [vmem:[%s8375_s3 + $0x6f4] ss:$12 sps:$4 sm:$0xff]  }
 0x1b3   :  { %4504 = vmatpush1.bf16.msra.mxu0 %v6207_v51  ;;  %v6276_v51 = vld [vmem:[%s8375_s3 + $0x888] ss:$12 sps:$4 sm:$0xff]  }
 0x1b4   :  { %4505 = vmatprep.subr.bf16.mxu0 %v6215_v21  ;;  %4547 = vmatpush1.bf16.msra.mxu1 %v6228_v22  ;;  %v6283_v21 = vld [vmem:[%s8375_s3 + $0x874] ss:$12 sps:$4 sm:$0xff]   ;;  %v353_v22 = vrot.slane %v7947_v4, %v7265_v35 }
 0x1b5   :  { %4548 = vmatprep.subr.bf16.mxu1 %v6236_v27  ;;  %v6261_v27 = vld [vmem:[%s8375_s3 + $0x6f0] ss:$12 sps:$4 sm:$0xff]  }
 0x1b7   :  { %4506 = vmatpush1.bf16.msra.mxu0 %v6213_v28 }
 0x1b8   :  { %4507 = vmatprep.subr.bf16.mxu0 %v6221_v29  ;;  %4549 = vmatpush1.bf16.msra.mxu1 %v6234_v17  ;;  %v6269_v29 = vld [vmem:[%s8375_s3 + $0x6dc] ss:$12 sps:$4 sm:$0xff]  }
 0x1b9   :  { %4550 = vmatprep.subr.bf16.mxu1 %v6242_v33  ;;  %v6281_v17 = vld [vmem:[%s8375_s3 + $0x870] ss:$12 sps:$4 sm:$0xff]  }
 0x1ba   :  { %v6288_v33 = vld [vmem:[%s8375_s3 + $0x85c] ss:$12 sps:$4 sm:$0xff]  }
 0x1bb   :  { %4508 = vmatpush1.bf16.msra.mxu0 %v6219_v34 }
 0x1bc   :  { %4509 = vmatprep.subr.bf16.mxu0 %v6227_v36  ;;  %4551 = vmatpush1.bf16.msra.mxu1 %v6240_v37  ;;  %v6267_v36 = vld [vmem:[%s8375_s3 + $0x6d8] ss:$12 sps:$4 sm:$0xff]  }
 0x1bd   :  { %4552 = vmatprep.subr.bf16.mxu1 %v6248_v38  ;;  %v6275_v38 = vld [vmem:[%s8375_s3 + $0x6c4] ss:$12 sps:$4 sm:$0xff]  }
 0x1bf   :  { %4510 = vmatpush1.bf16.msra.mxu0 %v6225_v39  ;;  %v6286_v39 = vld [vmem:[%s8375_s3 + $0x858] ss:$12 sps:$4 sm:$0xff]  }
 0x1c0   :  { %4511 = vmatprep.subr.bf16.mxu0 %v6233_v40  ;;  %4553 = vmatpush1.bf16.msra.mxu1 %v6246_v41  ;;  %v6293_v40 = vld [vmem:[%s8375_s3 + $0x844] ss:$12 sps:$4 sm:$0xff]  }
 0x1c1   :  { %4554 = vmatprep.subr.bf16.mxu1 %v6254_v31  ;;  %v6273_v31 = vld [vmem:[%s8375_s3 + $0x6c0] ss:$12 sps:$4 sm:$0xff]  }
 0x1c2   :  { %v2212_v45 = vpop.f32.mrf.mxu0 }
 0x1c3   :  { %4512 = vmatpush2.bf16.msra.mxu0 %v6231_v23  ;;  %v2213_v34 = vadd.f32 %v2212_v45, %v353_v22  ;;  %v6284_v45 = vld [vmem:[%s8375_s3 + $0x158] ss:$12 sps:$4 sm:$0xff]  }
 0x1c4   :  { %v2214_v3 = vpop.f32.mrf.mxu0  ;;  %4513 = vmatprep.subr.bf16.mxu0 %v6239_v42  ;;  %4555 = vmatpush2.bf16.msra.mxu1 %v6252_v43  ;;  %v6279_v42 = vld [vmem:[%s8375_s3 + $0x170] ss:$12 sps:$4 sm:$0xff]   ;;  %v6291_v43 = vld [vmem:[%s8375_s3 + $0x840] ss:$12 sps:$4 sm:$0xff]  }
 0x1c5   :  { %v2215_v52 = vadd.f32 %v2214_v3, %v357_v44  ;;  %4556 = vmatprep.subr.bf16.mxu1 %v6260_v32  ;;  %v2256_v41 = vadd.f32 %v7939_v2, %v2213_v34  ;;  %v6296_v2 = vld [vmem:[%s8375_s3 + $0x2f0] ss:$12 sps:$4 sm:$0xff]   ;;  %v361_v3 = vrot.slane %v7947_v4, %v7550_v26  ;;  %v6305_v34 = vld [vmem:[%s8375_s3 + $0xe0] ss:$12 sps:$4 sm:$0xff]  }
 0x1c6   :  { %v2216_v50 = vpop.f32.mrf.mxu0  ;;  %v6280_v32 = vld [vmem:[%s8375_s3 + $0xb0] ss:$12 sps:$4 sm:$0xff]  }
 0x1c7   :  { %4514 = vmatpush2.bf16.msra.mxu0 %v6237_v46  ;;  %v2258_v16 = vadd.f32 %v2257_v61, %v2215_v52  ;;  %v2217_v28 = vadd.f32 %v2216_v50, %v353_v22  ;;  %v365_v46 = vrot.slane %v7947_v4, %v332_v15  ;;  %v6285_v52 = vld [vmem:[%s8375_s3 + $0x98] ss:$12 sps:$4 sm:$0xff]  }
 0x1c8   :  { %v2218_v58 = vpop.f32.mrf.mxu0  ;;  %4515 = vmatprep.subr.bf16.mxu0 %v6245_v49  ;;  %4557 = vmatpush2.bf16.msra.mxu1 %v6258_v24 }
 0x1c9   :  { %v2219_v0 = vadd.f32 %v2218_v58, %v357_v44  ;;  %4558 = vmatprep.subr.bf16.mxu1 %v6266_v55  ;;  %v2359_v11 = vmax.f32 %v2258_v16, 0.0  ;;  %v2260_v37 = vadd.f32 %v2259_v57, %v2217_v28  ;;  %v2358_v44 = vmax.f32 %v2256_v41, 0.0  ;;  %v6301_v28 = vld [vmem:[%s8375_s3 + $0xf8] ss:$12 sps:$4 sm:$0xff]   ;;  %v6312_v41 = vld [vmem:[%s8375_s3 + $0x290] ss:$12 sps:$4 sm:$0xff]  }
 0x1cb   :  { %v2262_v7 = vadd.f32 %v2261_v5, %v2219_v0  ;;  %4516 = vmatpush2.bf16.msra.mxu0 %v6243_v53  ;;  %v2370_v23 = vmax.f32 %v2260_v37, 0.0  ;;  %v6308_v37 = vld [vmem:[%s8375_s3 + $0x2a8] ss:$12 sps:$4 sm:$0xff]  }
 0x1cc   :  { %4517 = vmatprep.subr.bf16.mxu0 %v6251_v59  ;;  %4559 = vmatpush2.bf16.msra.mxu1 %v6264_v62  ;;  %v6294_v62 = vld [vmem:[%s8375_s3 + $0x128] ss:$12 sps:$4 sm:$0xff]  }
 0x1cd   :  { %v2371_v13 = vmax.f32 %v2262_v7, 0.0  ;;  %4560 = vmatprep.subr.bf16.mxu1 %v6272_v1  ;;  %v8053_v61 = vpack.c.bf16 %v2370_v23, %v2358_v44  ;;  %v6313_v23 = vld [vmem:[%s8375_s3 + $0x1d0] ss:$12 sps:$4 sm:$0xff]   ;;  %v6317_v44 = vld [vmem:[%s8375_s3 + $0x1b8] ss:$12 sps:$4 sm:$0xff]  }
 0x1cf   :  { %4518 = vmatpush2.bf16.msra.mxu0 %v6249_v8  ;;  %v7996_v18 = vpack.c.bf16 %v2371_v13, %v2359_v11  ;;  %v6297_v11 = vld [vmem:[%s8375_s3 + $0x110] ss:$12 sps:$4 sm:$0xff]  }
 0x1d0   :  { %4519 = vmatprep.subr.bf16.mxu0 %v6257_v9  ;;  %4561 = vmatpush2.bf16.msra.mxu1 %v6270_v10  ;;  %v6295_v9 = vld [vmem:[%s8375_s3 + $0x68] ss:$12 sps:$4 sm:$0xff]  }
 0x1d1   :  { %4527 = vmatprep.mubr.bf16.mxu0 %v7996_v18  ;;  %4562 = vmatprep.subr.bf16.mxu1 %v6278_v14 }
 0x1d3   :  { %4520 = vmatpush2.bf16.msra.mxu0 %v6255_v6 }
 0x1d4   :  { %4521 = vmatprep.subr.bf16.mxu0 %v6263_v19  ;;  %4563 = vmatpush2.bf16.msra.mxu1 %v6276_v51  ;;  %v6298_v51 = vld [vmem:[%s8375_s3 + $0x230] ss:$12 sps:$4 sm:$0xff]  }
 0x1d5   :  { %4564 = vmatprep.subr.bf16.mxu1 %v6283_v21  ;;  %v6299_v21 = vld [vmem:[%s8375_s3 + $0x50] ss:$12 sps:$4 sm:$0xff]  }
 0x1d7   :  { %4522 = vmatpush2.bf16.msra.mxu0 %v6261_v27  ;;  %v6300_v27 = vld [vmem:[%s8375_s3 + $0x2d8] ss:$12 sps:$4 sm:$0xff]  }
 0x1d8   :  { %4523 = vmatprep.subr.bf16.mxu0 %v6269_v29  ;;  %4565 = vmatpush2.bf16.msra.mxu1 %v6281_v17  ;;  %v6302_v29 = vld [vmem:[%s8375_s3 + $0x218] ss:$12 sps:$4 sm:$0xff]  }
 0x1d9   :  { %4566 = vmatprep.subr.bf16.mxu1 %v6288_v33  ;;  %v6303_v17 = vld [vmem:[%s8375_s3 + $0x38] ss:$12 sps:$4 sm:$0xff]   ;;  %v6304_v33 = vld [vmem:[%s8375_s3 + $0x2c0] ss:$12 sps:$4 sm:$0xff]  }
 0x1db   :  { %4524 = vmatpush2.bf16.msra.mxu0 %v6267_v36  ;;  %v6306_v36 = vld [vmem:[%s8375_s3 + $0x200] ss:$12 sps:$4 sm:$0xff]  }
 0x1dc   :  { %4525 = vmatprep.subr.bf16.mxu0 %v6275_v38  ;;  %4567 = vmatpush2.bf16.msra.mxu1 %v6286_v39  ;;  %v6309_v38 = vld [vmem:[%s8375_s3 + $0xc8] ss:$12 sps:$4 sm:$0xff]  }
 0x1dd   :  { %4568 = vmatprep.subr.bf16.mxu1 %v6293_v40  ;;  %v6310_v39 = vld [vmem:[%s8375_s3 + $0x1e8] ss:$12 sps:$4 sm:$0xff]  }
 0x1de   :  { %v6311_v40 = vld [vmem:[%s8375_s3 + $0x8] ss:$12 sps:$4 sm:$0xff]  }
 0x1df   :  { %4526 = vmatpush2.bf16.msra.mxu0 %v6273_v31  ;;  %v6314_v31 = vld [vmem:[%s8375_s3 + $0x470] ss:$12 sps:$4 sm:$0xff]  }
 0x1e0   :  { %5428 = vmatprep.subr.bf16.mxu0 %v6279_v42  ;;  %4569 = vmatpush2.bf16.msra.mxu1 %v6291_v43  ;;  %v6315_v42 = vld [vmem:[%s8375_s3 + $0x3b0] ss:$12 sps:$4 sm:$0xff]   ;;  %v6316_v43 = vld [vmem:[%s8375_s3 + $0x278] ss:$12 sps:$4 sm:$0xff]  }
 0x1e1   :  { %5450 = vmatprep.subr.bf16.mxu1 %v6296_v2  ;;  %v6318_v2 = vld [vmem:[%s8375_s3 + $0x458] ss:$12 sps:$4 sm:$0xff]  }
 0x1e2   :  { %v2341_v24 = vpop.f32.mrf.mxu0  ;;  %4528 = vmatmul.mubr.bf16.vlgmr.msra.gmra.mxu0 %v8053_v61 }
 0x1e3   :  { %v2298_v49 = vpop.f32.mrf.mxu1  ;;  %5429 = vmatpush3.bf16.msra.mxu0 %v6280_v32  ;;  %4613 = vmatprep.mubr.bf16.mxu0 %v7398_v20  ;;  %v6290_v20 = vld [vmem:[%s8375_s3 + $0x80] ss:$12 sps:$4 sm:$0xff]   ;;  %v6319_v32 = vld [vmem:[%s8375_s3 + $0x398] ss:$12 sps:$4 sm:$0xff]  }
 0x1e4   :  { %v2343_v57 = vpop.f32.mrf.mxu0  ;;  %5430 = vmatprep.subr.bf16.mxu0 %v6284_v45  ;;  %v2299_v4 = vadd.f32 %v2298_v49, %v361_v3  ;;  %v6320_v45 = vld [vmem:[%s8375_s3 + $0x260] ss:$12 sps:$4 sm:$0xff]   ;;  %v6326_v49 = vld [vmem:[%s8375_s3 + $0x428] ss:$12 sps:$4 sm:$0xff]  }
 0x1e5   :  { %v2300_v55 = vpop.f32.mrf.mxu1 }
 0x1e6   :  { %v2301_v15 = vadd.f32 %v2300_v55, %v365_v46  ;;  %v2345_v53 = vpop.f32.mrf.mxu0  ;;  %v2342_v5 = vadd.f32 %v2341_v24, %v2299_v4  ;;  %v6325_v24 = vld [vmem:[%s8375_s3 + $0x188] ss:$12 sps:$4 sm:$0xff]   ;;  %v6328_v55 = vld [vmem:[%s8375_s3 + $0x5f0] ss:$12 sps:$4 sm:$0xff]   ;;  %v6332_v4 = vld [vmem:[%s8375_s3 + $0x5d8] ss:$12 sps:$4 sm:$0xff]  }
 0x1e7   :  { %v2302_v50 = vpop.f32.mrf.mxu1  ;;  %5431 = vmatpush3.bf16.msra.mxu0 %v6285_v52  ;;  %v6327_v52 = vld [vmem:[%s8375_s3 + $0x368] ss:$12 sps:$4 sm:$0xff]  }
 0x1e8   :  { %v2303_v58 = vadd.f32 %v2302_v50, %v361_v3  ;;  %5432 = vmatprep.subr.bf16.mxu0 %v6289_v12  ;;  %v2344_v16 = vadd.f32 %v2343_v57, %v2301_v15  ;;  %v2347_v7 = vpop.f32.mrf.mxu0  ;;  %v2360_v6 = vmax.f32 %v2342_v5, 0.0  ;;  %v6324_v3 = vld [vmem:[%s8375_s3 + $0x248] ss:$12 sps:$4 sm:$0xff]   ;;  %v6329_v57 = vld [vmem:[%s8375_s3 + $0x410] ss:$12 sps:$4 sm:$0xff]  }
 0x1e9   :  { %v2304_v59 = vpop.f32.mrf.mxu1  ;;  %v6330_v12 = vld [vmem:[%s8375_s3 + $0x530] ss:$12 sps:$4 sm:$0xff]   ;;  %v6333_v50 = vld [vmem:[%s8375_s3 + $0x3f8] ss:$12 sps:$4 sm:$0xff]  }
 0x1ea   :  { %v2346_v0 = vadd.f32 %v2345_v53, %v2303_v58  ;;  %v2305_v1 = vadd.f32 %v2304_v59, %v365_v46  ;;  %v2361_v13 = vmax.f32 %v2344_v16, 0.0  ;;  %v6321_v46 = vld [vmem:[%s8375_s3 + $0x1a0] ss:$12 sps:$4 sm:$0xff]   ;;  %v6331_v15 = vld [vmem:[%s8375_s3 + $0x350] ss:$12 sps:$4 sm:$0xff]  }
 0x1eb   :  { %5433 = vmatpush3.bf16.msra.mxu0 %v6290_v20  ;;  %v6334_v53 = vld [vmem:[%s8375_s3 + $0x518] ss:$12 sps:$4 sm:$0xff]   ;;  %v6336_v20 = vld [vmem:[%s8375_s3 + $0x5c0] ss:$12 sps:$4 sm:$0xff]   ;;  %v6341_v16 = vld [vmem:[%s8375_s3 + $0x3c8] ss:$12 sps:$4 sm:$0xff]  }
 0x1ec   :  { %v2348_v8 = vadd.f32 %v2347_v7, %v2305_v1  ;;  %v2372_v10 = vmax.f32 %v2346_v0, 0.0  ;;  %5434 = vmatprep.subr.bf16.mxu0 %v6294_v62  ;;  %v6335_v58 = vld [vmem:[%s8375_s3 + $0x338] ss:$12 sps:$4 sm:$0xff]   ;;  %v6339_v59 = vld [vmem:[%s8375_s3 + $0x320] ss:$12 sps:$4 sm:$0xff]  }
 0x1ed   :  { %v6340_v62 = vld [vmem:[%s8375_s3 + $0x5a8] ss:$12 sps:$4 sm:$0xff]   ;;  %v6344_v5 = vld [vmem:[%s8375_s3 + $0x590] ss:$12 sps:$4 sm:$0xff]  }
 0x1ee   :  { %v2373_v14 = vmax.f32 %v2348_v8, 0.0  ;;  %v8091_v22 = vpack.c.bf16 %v2372_v10, %v2360_v6  ;;  %v6342_v0 = vld [vmem:[%s8375_s3 + $0x4e8] ss:$12 sps:$4 sm:$0xff]   ;;  %v6346_v7 = vld [vmem:[%s8375_s3 + $0x770] ss:$12 sps:$4 sm:$0xff]  }
 0x1ef   :  { %5435 = vmatpush3.bf16.msra.mxu0 %v6295_v9  ;;  %v6343_v1 = vld [vmem:[%s8375_s3 + $0x308] ss:$12 sps:$4 sm:$0xff]   ;;  %v6345_v8 = vld [vmem:[%s8375_s3 + $0x4d0] ss:$12 sps:$4 sm:$0xff]   ;;  %v6348_v10 = vld [vmem:[%s8375_s3 + $0x578] ss:$12 sps:$4 sm:$0xff]  }
 0x1f0   :  { %v8083_v19 = vpack.c.bf16 %v2373_v14, %v2361_v13  ;;  %5436 = vmatprep.subr.bf16.mxu0 %v6297_v11  ;;  %v6347_v9 = vld [vmem:[%s8375_s3 + $0x6b0] ss:$12 sps:$4 sm:$0xff]   ;;  %v6350_v11 = vld [vmem:[%s8375_s3 + $0x758] ss:$12 sps:$4 sm:$0xff]   ;;  %v6352_v6 = vld [vmem:[%s8375_s3 + $0x560] ss:$12 sps:$4 sm:$0xff]  }
 0x1f1   :  { %v6349_v13 = vld [vmem:[%s8375_s3 + $0x4b8] ss:$12 sps:$4 sm:$0xff]  }
 0x1f2   :  { %4570 = vmatprep.mubr.bf16.mxu1 %v8083_v19  ;;  %v6351_v14 = vld [vmem:[%s8375_s3 + $0x698] ss:$12 sps:$4 sm:$0xff]  }
 0x1f3   :  { %4571 = vmatmul.mubr.bf16.vlgmr.msra.gmra.mxu1 %v8091_v22  ;;  %5437 = vmatpush3.bf16.msra.mxu0 %v6299_v21  ;;  %v6356_v21 = vld [vmem:[%s8375_s3 + $0x548] ss:$12 sps:$4 sm:$0xff]  }
 0x1f4   :  { %5451 = vmatpush3.bf16.msra.mxu1 %v6298_v51  ;;  %4654 = vmatprep.mubr.bf16.mxu1 %v7453_v47  ;;  %v6307_v47 = vld [vmem:[%s8375_s3 + $0x20] ss:$12 sps:$4 sm:$0xff]  }
 0x1f5   :  { %5452 = vmatprep.subr.bf16.mxu1 %v6300_v27  ;;  %5438 = vmatprep.subr.bf16.mxu0 %v6301_v28  ;;  %v6353_v51 = vld [vmem:[%s8375_s3 + $0x4a0] ss:$12 sps:$4 sm:$0xff]   ;;  %v6358_v27 = vld [vmem:[%s8375_s3 + $0x728] ss:$12 sps:$4 sm:$0xff]  }
 0x1f6   :  { %v6357_v28 = vld [vmem:[%s8375_s3 + $0x488] ss:$12 sps:$4 sm:$0xff]  }
 0x1f7   :  { %5439 = vmatpush3.bf16.msra.mxu0 %v6303_v17  ;;  %v6360_v17 = vld [vmem:[%s8375_s3 + $0x8f0] ss:$12 sps:$4 sm:$0xff]  }
 0x1f8   :  { %5453 = vmatpush3.bf16.msra.mxu1 %v6302_v29  ;;  %5440 = vmatprep.subr.bf16.mxu0 %v6305_v34  ;;  %v6359_v29 = vld [vmem:[%s8375_s3 + $0x668] ss:$12 sps:$4 sm:$0xff]   ;;  %v6362_v34 = vld [vmem:[%s8375_s3 + $0x830] ss:$12 sps:$4 sm:$0xff]  }
 0x1f9   :  { %5454 = vmatprep.subr.bf16.mxu1 %v6304_v33  ;;  %v6361_v33 = vld [vmem:[%s8375_s3 + $0x710] ss:$12 sps:$4 sm:$0xff]  }
 0x1fb   :  { %5441 = vmatpush3.bf16.msra.mxu0 %v6307_v47  ;;  %v6364_v47 = vld [vmem:[%s8375_s3 + $0x8d8] ss:$12 sps:$4 sm:$0xff]  }
 0x1fc   :  { %5455 = vmatpush3.bf16.msra.mxu1 %v6306_v36  ;;  %5442 = vmatprep.subr.bf16.mxu0 %v6309_v38  ;;  %v6363_v36 = vld [vmem:[%s8375_s3 + $0x650] ss:$12 sps:$4 sm:$0xff]   ;;  %v6366_v38 = vld [vmem:[%s8375_s3 + $0x818] ss:$12 sps:$4 sm:$0xff]  }
 0x1fd   :  { %5456 = vmatprep.subr.bf16.mxu1 %v6308_v37  ;;  %v6365_v37 = vld [vmem:[%s8375_s3 + $0x6f8] ss:$12 sps:$4 sm:$0xff]  }
 0x1ff   :  { %5443 = vmatpush3.bf16.msra.mxu0 %v6311_v40  ;;  %v6368_v40 = vld [vmem:[%s8375_s3 + $0x8c0] ss:$12 sps:$4 sm:$0xff]  }
 0x200   :  { %5457 = vmatpush3.bf16.msra.mxu1 %v6310_v39  ;;  %5472 = vmatprep.subr.bf16.mxu0 %v6314_v31  ;;  %v6367_v39 = vld [vmem:[%s8375_s3 + $0x638] ss:$12 sps:$4 sm:$0xff]   ;;  %v6372_v31 = vld [vmem:[%s8375_s3 + $0x8a8] ss:$12 sps:$4 sm:$0xff]  }
 0x201   :  { %5458 = vmatprep.subr.bf16.mxu1 %v6312_v41  ;;  %v6371_v41 = vld [vmem:[%s8375_s3 + $0x620] ss:$12 sps:$4 sm:$0xff]  }
 0x202   :  { %4614 = vmatmul.mubr.bf16.vlgmr.msra.gmra.mxu0 %v7332_v48  ;;  %v6322_v48 = vld [vmem:[%s8375_s3 + $0x440] ss:$12 sps:$4 sm:$0xff]  }
 0x203   :  { %5473 = vmatpush3.bf16.msra.mxu0 %v6315_v42  ;;  %4695 = vmatprep.mubr.bf16.mxu0 %v7677_v30  ;;  %v6323_v30 = vld [vmem:[%s8375_s3 + $0x380] ss:$12 sps:$4 sm:$0xff]   ;;  %v6374_v42 = vld [vmem:[%s8375_s3 + $0x7e8] ss:$12 sps:$4 sm:$0xff]  }
 0x204   :  { %5459 = vmatpush3.bf16.msra.mxu1 %v6313_v23  ;;  %5474 = vmatprep.subr.bf16.mxu0 %v6318_v2  ;;  %v6373_v23 = vld [vmem:[%s8375_s3 + $0x6c8] ss:$12 sps:$4 sm:$0xff]   ;;  %v6376_v2 = vld [vmem:[%s8375_s3 + $0x890] ss:$12 sps:$4 sm:$0xff]  }
 0x205   :  { %5460 = vmatprep.subr.bf16.mxu1 %v6316_v43  ;;  %v6375_v43 = vld [vmem:[%s8375_s3 + $0x608] ss:$12 sps:$4 sm:$0xff]  }
 0x207   :  { %5475 = vmatpush3.bf16.msra.mxu0 %v6319_v32  ;;  %v6378_v32 = vld [vmem:[%s8375_s3 + $0x878] ss:$12 sps:$4 sm:$0xff]  }
 0x208   :  { %5461 = vmatpush3.bf16.msra.mxu1 %v6317_v44  ;;  %5476 = vmatprep.subr.bf16.mxu0 %v6322_v48  ;;  %v6377_v44 = vld [vmem:[%s8375_s3 + $0x7d0] ss:$12 sps:$4 sm:$0xff]   ;;  %v6380_v48 = vld [vmem:[%s8375_s3 + $0x860] ss:$12 sps:$4 sm:$0xff]  }
 0x209   :  { %5462 = vmatprep.subr.bf16.mxu1 %v6320_v45  ;;  %v6379_v45 = vld [vmem:[%s8375_s3 + $0x7b8] ss:$12 sps:$4 sm:$0xff]  }
 0x20b   :  { %5477 = vmatpush3.bf16.msra.mxu0 %v6323_v30  ;;  %v6383_v30 = vld [vmem:[%s8375_s3 + $0x788] ss:$12 sps:$4 sm:$0xff]  }
 0x20c   :  { %5463 = vmatpush3.bf16.msra.mxu1 %v6321_v46  ;;  %5478 = vmatprep.subr.bf16.mxu0 %v6326_v49  ;;  %v6381_v46 = vld [vmem:[%s8375_s3 + $0x7a0] ss:$12 sps:$4 sm:$0xff]  }
 0x20d   :  { %5464 = vmatprep.subr.bf16.mxu1 %v6324_v3 }
 0x20f   :  { %5479 = vmatpush3.bf16.msra.mxu0 %v6327_v52 }
 0x210   :  { %5465 = vmatpush3.bf16.msra.mxu1 %v6325_v24  ;;  %5480 = vmatprep.subr.bf16.mxu0 %v6329_v57 }
 0x211   :  { %5494 = vmatprep.subr.bf16.mxu1 %v6328_v55 }
 0x213   :  { %4655 = vmatmul.mubr.bf16.vlgmr.msra.gmra.mxu1 %v7621_v56  ;;  %5481 = vmatpush3.bf16.msra.mxu0 %v6331_v15  ;;  %v6337_v56 = vld [vmem:[%s8375_s3 + $0x3e0] ss:$12 sps:$4 sm:$0xff]  }
 0x214   :  { %5495 = vmatpush3.bf16.msra.mxu1 %v6330_v12  ;;  %4736 = vmatprep.mubr.bf16.mxu1 %v7786_v25  ;;  %v6338_v25 = vld [vmem:[%s8375_s3 + $0x500] ss:$12 sps:$4 sm:$0xff]  }
 0x215   :  { %5496 = vmatprep.subr.bf16.mxu1 %v6332_v4  ;;  %5482 = vmatprep.subr.bf16.mxu0 %v6333_v50  ;;  %v8361_v15 = vld [vmem:[%s8376_s4] sm:$0x7] }
 0x217   :  { %5483 = vmatpush3.bf16.msra.mxu0 %v6335_v58 }
 0x218   :  { %5497 = vmatpush3.bf16.msra.mxu1 %v6334_v53  ;;  %5484 = vmatprep.subr.bf16.mxu0 %v6337_v56  ;;  %v2775_v53 = vrot.slane %v8361_v15, %v7265_v35 }
 0x219   :  { %5498 = vmatprep.subr.bf16.mxu1 %v6336_v20 }
 0x21b   :  { %5485 = vmatpush3.bf16.msra.mxu0 %v6339_v59 }
 0x21c   :  { %5499 = vmatpush3.bf16.msra.mxu1 %v6338_v25  ;;  %5486 = vmatprep.subr.bf16.mxu0 %v6341_v16 }
 0x21d   :  { %5500 = vmatprep.subr.bf16.mxu1 %v6340_v62 }
 0x21f   :  { %5487 = vmatpush3.bf16.msra.mxu0 %v6343_v1 }
 0x220   :  { %5501 = vmatpush3.bf16.msra.mxu1 %v6342_v0  ;;  %5516 = vmatprep.subr.bf16.mxu0 %v6346_v7 }
 0x221   :  { %5502 = vmatprep.subr.bf16.mxu1 %v6344_v5 }
 0x222   :  { %4696 = vmatmul.mubr.bf16.vlgmr.msra.gmra.mxu0 %v7840_v60  ;;  %v6354_v60 = vld [vmem:[%s8375_s3 + $0x740] ss:$12 sps:$4 sm:$0xff]   ;;  %v4357_v3 = vpop.f32.mrf.mxu0 }
 0x223   :  { %5517 = vmatpush3.bf16.msra.mxu0 %v6347_v9  ;;  %4777 = vmatprep.mubr.bf16.mxu0 %v7996_v18  ;;  %v6355_v18 = vld [vmem:[%s8375_s3 + $0x680] ss:$12 sps:$4 sm:$0xff]   ;;  %v4400_v52 = vpop.f32.mrf.mxu1  ;;  %v4358_v25 = vadd.f32 %v4357_v3, %v2775_v53 }
 0x224   :  { %5503 = vmatpush3.bf16.msra.mxu1 %v6345_v8  ;;  %5518 = vmatprep.subr.bf16.mxu0 %v6350_v11  ;;  %v4359_v49 = vpop.f32.mrf.mxu0 }
 0x225   :  { %5504 = vmatprep.subr.bf16.mxu1 %v6348_v10  ;;  %v4402_v57 = vpop.f32.mrf.mxu1  ;;  %v4401_v1 = vadd.f32 %v4400_v52, %v4358_v25  ;;  %v2783_v52 = vrot.slane %v8361_v15, %v7550_v26 }
 0x226   :  { %v4361_v24 = vpop.f32.mrf.mxu0 }
 0x227   :  { %5519 = vmatpush3.bf16.msra.mxu0 %v6351_v14  ;;  %v4404_v4 = vpop.f32.mrf.mxu1  ;;  %v4362_v5 = vadd.f32 %v4361_v24, %v2775_v53 }
 0x228   :  { %5505 = vmatpush3.bf16.msra.mxu1 %v6349_v13  ;;  %5520 = vmatprep.subr.bf16.mxu0 %v6354_v60  ;;  %v4363_v55 = vpop.f32.mrf.mxu0 }
 0x229   :  { %5506 = vmatprep.subr.bf16.mxu1 %v6352_v6  ;;  %v4406_v58 = vpop.f32.mrf.mxu1  ;;  %v4405_v13 = vadd.f32 %v4404_v4, %v4362_v5 }
 0x22b   :  { %5521 = vmatpush3.bf16.msra.mxu0 %v6355_v18 }
 0x22c   :  { %5507 = vmatpush3.bf16.msra.mxu1 %v6353_v51  ;;  %5522 = vmatprep.subr.bf16.mxu0 %v6358_v27 }
 0x22d   :  { %5508 = vmatprep.subr.bf16.mxu1 %v6356_v21 }
 0x22f   :  { %5523 = vmatpush3.bf16.msra.mxu0 %v6359_v29 }
 0x230   :  { %5509 = vmatpush3.bf16.msra.mxu1 %v6357_v28  ;;  %5524 = vmatprep.subr.bf16.mxu0 %v6361_v33 }
 0x231   :  { %5538 = vmatprep.subr.bf16.mxu1 %v6360_v17 }
 0x233   :  { %4737 = vmatmul.mubr.bf16.vlgmr.msra.gmra.mxu1 %v7848_v63  ;;  %5525 = vmatpush3.bf16.msra.mxu0 %v6363_v36  ;;  %v6369_v63 = vld [vmem:[%s8375_s3 + $0x6e0] ss:$12 sps:$4 sm:$0xff]  }
 0x234   :  { %5539 = vmatpush3.bf16.msra.mxu1 %v6362_v34  ;;  %4818 = vmatprep.mubr.bf16.mxu1 %v8083_v19  ;;  %v6370_v19 = vld [vmem:[%s8375_s3 + $0x800] ss:$12 sps:$4 sm:$0xff]  }
 0x235   :  { %5540 = vmatprep.subr.bf16.mxu1 %v6364_v47  ;;  %5526 = vmatprep.subr.bf16.mxu0 %v6365_v37 }
 0x237   :  { %5527 = vmatpush3.bf16.msra.mxu0 %v6367_v39 }
 0x238   :  { %5541 = vmatpush3.bf16.msra.mxu1 %v6366_v38  ;;  %5528 = vmatprep.subr.bf16.mxu0 %v6369_v63 }
 0x239   :  { %5542 = vmatprep.subr.bf16.mxu1 %v6368_v40 }
 0x23b   :  { %5529 = vmatpush3.bf16.msra.mxu0 %v6371_v41 }
 0x23c   :  { %5543 = vmatpush3.bf16.msra.mxu1 %v6370_v19  ;;  %5530 = vmatprep.subr.bf16.mxu0 %v6373_v23 }
 0x23d   :  { %5544 = vmatprep.subr.bf16.mxu1 %v6372_v31 }
 0x23f   :  { %5531 = vmatpush3.bf16.msra.mxu0 %v6375_v43 }
 0x240   :  { %5545 = vmatpush3.bf16.msra.mxu1 %v6374_v42 }
 0x241   :  { %5546 = vmatprep.subr.bf16.mxu1 %v6376_v2 }
 0x242   :  { %4778 = vmatmul.mubr.bf16.vlgmr.msra.gmra.mxu0 %v8053_v61  ;;  %v6382_v61 = vld [vmem:[%s8375_s3 + $0x848] ss:$12 sps:$4 sm:$0xff]   ;;  %s6411_s3 = smov [#allocation2]  }
 0x243   :  { %s4838_s4 = sshll.u32 %s6411_s3, 4  ;;  %s4839_s4 = int_to_ptr.vmem [resolvable:$true] %s4838_s4 }
 0x244   :  { %5547 = vmatpush3.bf16.msra.mxu1 %v6377_v44  ;;  %s6388_s1 = scalar_lea.vmem %s4839_s4, 768  ;;  %p6393_p1 = scmp.lt.s32.totalorder %s4839_s4, %s4839_s4 }
 0x245   :  { %5548 = vmatprep.subr.bf16.mxu1 %v6378_v32  ;;  %p6389_p0 = scmp.ne.s32.totalorder %s4839_s4, %s6388_s1  ;;  %p6394_p2 = scmp.lt.s32.totalorder %s6388_s1, %s6388_s1 }
 0x247   :  { %p6395_p3 = por %p6394_p2, %p6393_p1 }
 0x248   :  { %5549 = vmatpush3.bf16.msra.mxu1 %v6379_v45 }
 0x249   :  { %5550 = vmatprep.subr.bf16.mxu1 %v6380_v48  ;;  %p6396_p4 = pnand %p6395_p3, %p6389_p0 }
 0x24c   :  { %5551 = vmatpush3.bf16.msra.mxu1 %v6381_v46 }
 0x24d   :  { %5552 = vmatprep.subr.bf16.mxu1 %v6382_v61 }
 0x250   :  { %5553 = vmatpush3.bf16.msra.mxu1 %v6383_v30 }
 0x253   :  { %4819 = vmatmul.mubr.bf16.vlgmr.msra.gmra.mxu1 %v8091_v22  ;;  %v2779_v22 = vrot.slane %v8361_v15, %v7347_v54 }
 0x255   :  { %v4360_v62 = vadd.f32 %v4359_v49, %v2779_v22  ;;  %v4364_v8 = vadd.f32 %v4363_v55, %v2779_v22 }
 0x257   :  { %v4403_v7 = vadd.f32 %v4402_v57, %v4360_v62  ;;  %v4407_v14 = vadd.f32 %v4406_v58, %v4364_v8 }
 0x262   :  { %v4443_v12 = vpop.f32.mrf.mxu0 }
 0x263   :  { %v4486_v56 = vpop.f32.mrf.mxu1  ;;  %v4444_v9 = vadd.f32 %v4443_v12, %v4401_v1 }
 0x264   :  { %v4445_v50 = vpop.f32.mrf.mxu0 }
 0x265   :  { %v4488_v16 = vpop.f32.mrf.mxu1  ;;  %v4446_v35 = vadd.f32 %v4445_v50, %v4403_v7  ;;  %v4487_v6 = vadd.f32 %v4486_v56, %v4444_v9 }
 0x266   :  { %v4447_v20 = vpop.f32.mrf.mxu0 }
 0x267   :  { %v4490_v10 = vpop.f32.mrf.mxu1  ;;  %v4448_v60 = vadd.f32 %v4447_v20, %v4405_v13  ;;  %v4489_v18 = vadd.f32 %v4488_v16, %v4446_v35 }
 0x268   :  { %v4449_v59 = vpop.f32.mrf.mxu0 }
 0x269   :  { %v4492_v51 = vpop.f32.mrf.mxu1  ;;  %v4450_v21 = vadd.f32 %v4449_v59, %v4407_v14  ;;  %v4491_v29 = vadd.f32 %v4490_v10, %v4448_v60 }
 0x26b   :  { %v4493_v47 = vadd.f32 %v4492_v51, %v4450_v21 }
 0x2a2   :  { %v4529_v0 = vpop.f32.mrf.mxu0 }
 0x2a3   :  { %v4530_v27 = vadd.f32 %v4529_v0, %v4487_v6 }
 0x2a4   :  { %v4531_v11 = vpop.f32.mrf.mxu0 }
 0x2a5   :  { %v4532_v17 = vadd.f32 %v4531_v11, %v4489_v18 }
 0x2a6   :  { %v4533_v54 = vpop.f32.mrf.mxu0 }
 0x2a7   :  { %v4534_v37 = vadd.f32 %v4533_v54, %v4491_v29 }
 0x2a8   :  { %v4535_v34 = vpop.f32.mrf.mxu0 }
 0x2a9   :  { %v4536_v40 = vadd.f32 %v4535_v34, %v4493_v47 }
 0x2b3   :  { %v4572_v28 = vpop.f32.mrf.mxu1 }
 0x2b4   :  { %v4573_v33 = vadd.f32 %v4572_v28, %v4530_v27 }
 0x2b5   :  { %v4574_v36 = vpop.f32.mrf.mxu1 }
 0x2b6   :  { %4827 = vst [vmem:[#allocation2] sm:$0xff] %v4573_v33  ;;  %v4575_v38 = vadd.f32 %v4574_v36, %v4532_v17 }
 0x2b7   :  { %v4576_v39 = vpop.f32.mrf.mxu1 }
 0x2b8   :  { %4828 = vst [vmem:[#allocation2 + $0x8] sm:$0xff] %v4575_v38  ;;  %v4577_v63 = vadd.f32 %v4576_v39, %v4534_v37 }
 0x2b9   :  { %v4578_v19 = vpop.f32.mrf.mxu1 }
 0x2ba   :  { %4830 = vst [vmem:[#allocation2 + $0x18] sm:$0xff] %v4577_v63  ;;  %v4579_v41 = vadd.f32 %v4578_v19, %v4536_v40 }
 0x2bc   :  { %4831 = vst [vmem:[#allocation2 + $0x20] sm:$0xff] %v4579_v41 }
 0x2c2   :  { %v5444_v31 = vpop.f32.mrf.mxu0 }
 0x2c4   :  { %v5445_v23 = vpop.f32.mrf.mxu0 }
 0x2c5   :  { %v5446_v55 = vadd.f32 %v5445_v23, %v5444_v31 }
 0x2c6   :  { %v5447_v42 = vpop.f32.mrf.mxu0 }
 0x2c7   :  { %v4616_v50 = vadd.f32 %v5446_v55, %v2783_v52 }
 0x2c8   :  { %v5448_v43 = vpop.f32.mrf.mxu0 }
 0x2c9   :  { %v5449_v53 = vadd.f32 %v5448_v43, %v5447_v42 }
 0x2cb   :  { %v4619_v62 = vadd.f32 %v5449_v53, %v2783_v52 }
 0x2d3   :  { %v5466_v2 = vpop.f32.mrf.mxu1 }
 0x2d5   :  { %v5467_v32 = vpop.f32.mrf.mxu1 }
 0x2d6   :  { %v5468_v12 = vadd.f32 %v5467_v32, %v5466_v2 }
 0x2d7   :  { %v5469_v48 = vpop.f32.mrf.mxu1 }
 0x2d8   :  { %v4657_v22 = vadd.f32 %v5468_v12, %v4616_v50 }
 0x2d9   :  { %v5470_v61 = vpop.f32.mrf.mxu1 }
 0x2da   :  { %v5471_v56 = vadd.f32 %v5470_v61, %v5469_v48 }
 0x2dc   :  { %v4660_v8 = vadd.f32 %v5471_v56, %v4619_v62 }
 0x2e2   :  { %v5488_v44 = vpop.f32.mrf.mxu0 }
 0x2e4   :  { %v5489_v45 = vpop.f32.mrf.mxu0 }
 0x2e5   :  { %v5490_v58 = vadd.f32 %v5489_v45, %v5488_v44 }
 0x2e6   :  { %v5491_v46 = vpop.f32.mrf.mxu0 }
 0x2e7   :  { %v4698_v16 = vadd.f32 %v5490_v58, %v4657_v22 }
 0x2e8   :  { %v5492_v30 = vpop.f32.mrf.mxu0 }
 0x2e9   :  { %v5493_v0 = vadd.f32 %v5492_v30, %v5491_v46 }
 0x2eb   :  { %v4701_v10 = vadd.f32 %v5493_v0, %v4660_v8 }
 0x2f3   :  { %v5510_v3 = vpop.f32.mrf.mxu1 }
 0x2f5   :  { %v5511_v24 = vpop.f32.mrf.mxu1 }
 0x2f6   :  { %v5512_v25 = vadd.f32 %v5511_v24, %v5510_v3 }
 0x2f7   :  { %v5513_v4 = vpop.f32.mrf.mxu1 }
 0x2f8   :  { %v4739_v26 = vadd.f32 %v5512_v25, %v4698_v16 }
 0x2f9   :  { %v5514_v59 = vpop.f32.mrf.mxu1 }
 0x2fa   :  { %v5515_v15 = vadd.f32 %v5514_v59, %v5513_v4 }
 0x2fc   :  { %v4742_v6 = vadd.f32 %v5515_v15, %v4701_v10 }
 0x302   :  { %v5532_v49 = vpop.f32.mrf.mxu0 }
 0x304   :  { %v5533_v57 = vpop.f32.mrf.mxu0 }
 0x305   :  { %v5534_v1 = vadd.f32 %v5533_v57, %v5532_v49 }
 0x306   :  { %v5535_v20 = vpop.f32.mrf.mxu0 }
 0x307   :  { %v4780_v11 = vadd.f32 %v5534_v1, %v4739_v26 }
 0x308   :  { %v5536_v5 = vpop.f32.mrf.mxu0 }
 0x309   :  { %v5537_v13 = vadd.f32 %v5536_v5, %v5535_v20 }
 0x30b   :  { %v4783_v54 = vadd.f32 %v5537_v13, %v4742_v6 }
 0x313   :  { %v5554_v7 = vpop.f32.mrf.mxu1 }
 0x315   :  { %v5555_v9 = vpop.f32.mrf.mxu1 }
 0x316   :  { %v5556_v35 = vadd.f32 %v5555_v9, %v5554_v7 }
 0x317   :  { %v5557_v14 = vpop.f32.mrf.mxu1 }
 0x318   :  { %v4821_v60 = vadd.f32 %v5556_v35, %v4780_v11 }
 0x319   :  { %v5558_v51 = vpop.f32.mrf.mxu1 }
 0x31a   :  { %4829 = vst [vmem:[#allocation2 + $0x10] sm:$0xff] %v4821_v60  ;;  %v5559_v18 = vadd.f32 %v5558_v51, %v5557_v14 }
 0x31c   :  { %v4824_v21 = vadd.f32 %v5559_v18, %v4783_v54 }
 0x31e   :  { %4832 = vst [vmem:[#allocation2 + $0x28] sm:$0xff] %v4824_v21 }
 0x31f   :  { %6399 = shalt.err (!%p6396_p4)
}
 0x320   :  { %s6412_s0 = smov 384   ;;  %s6413_s12 = smov 24  }
 0x321   :  { %4844 = dma.vmem_to_hbm [thread:$0]  %s4839_s4, 768, %s8377_s5, [#allocation3], %s6412_s0, %s6412_s0, %s6413_s12  }
 0x322   :  { %6408 = dma.done.wait [#allocation3], 768  }
 0x323   :  { %6409 = vsyncadd [#allocation3], 4294966528 }
 0x324   :  { %4848 = vsyncpa [#allocation3], 1 }

</bundles_post_ra>
